<compile_context>
chip_gen: v7x
topology: tpu7x:2x2x1
jax: 0.10.0
libtpu: 0.0.40
codegen_flags: <defaults>
</compile_context>

<pallas_src>
from functools import partial

import jax
import jax.numpy as jnp
from jax.experimental import pallas as pl
from jax.experimental.pallas import tpu as pltpu


# -----------------------------------------------------------------------------
# Pallas kernel: one RecGCN block (GraphConv -> GRUCell -> ELU) for TILE_N rows
# -----------------------------------------------------------------------------
def recgcn_block_kernel(adj_ref, dsrc_ref, ddst_ref, hin_ref, hhid_ref,
                        wg_ref, bg_ref, wih_ref, bih_ref, whh_ref, bhh_ref,
                        out_ref, *, F):
    """adj_ref: (TN, Np) int8 rows of A (dst rows); hin_ref: (Np, Fin) all source feats
    (resident across grid steps); hhid_ref: (TN, F) previous hidden rows."""
    # --- GraphConv (norm='both'): agg[v] = d_dst[v] * sum_u A[v,u] * d_src[u] * h[u]
    a = adj_ref[...].astype(jnp.float32) * dsrc_ref[...]            # (TN, Np), mask+src-norm once
    agg = jnp.dot(a, hin_ref[...], preferred_element_type=jnp.float32)   # (TN, Fin)  MXU
    agg = agg * ddst_ref[...]                                        # dst-norm, (TN,1) broadcast
    x = jnp.dot(agg, wg_ref[...], preferred_element_type=jnp.float32) + bg_ref[...]   # (TN, F)

    # --- GRUCell (PyTorch semantics, gate chunks r|z|n), batched 3F-wide gate matmuls
    h_prev = hhid_ref[...]                                           # (TN, F)
    gi = jnp.dot(x, wih_ref[...], preferred_element_type=jnp.float32) + bih_ref[...]      # (TN, 3F)
    gh = jnp.dot(h_prev, whh_ref[...], preferred_element_type=jnp.float32) + bhh_ref[...] # (TN, 3F)

    def _sigmoid(t):                     # explicit exp-based sigmoid (EUP path)
        return 1.0 / (1.0 + jnp.exp(-t))

    r = _sigmoid(gi[:, 0 * F:1 * F] + gh[:, 0 * F:1 * F])
    z = _sigmoid(gi[:, 1 * F:2 * F] + gh[:, 1 * F:2 * F])
    n = jnp.tanh(gi[:, 2 * F:3 * F] + r * gh[:, 2 * F:3 * F])
    h_new = (1.0 - z) * n + z * h_prev

    # --- ELU: exp only on the clamped non-positive branch -> no inf in untaken lane
    out_ref[...] = jnp.where(h_new > 0, h_new,
                             jnp.exp(jnp.minimum(h_new, 0.0)) - 1.0)


def _recgcn_block(adj_i8, dsrc, ddst, h_in, h_hid, Wg, bg, Wih, bih, Whh, bhh,
                  *, tile_n):
    """Run one fused RecGCN block over all node-row tiles."""
    Np = adj_i8.shape[0]
    Fin = h_in.shape[1]
    F = h_hid.shape[1]
    kern = partial(recgcn_block_kernel, F=F)
    return pl.pallas_call(
        kern,
        out_shape=jax.ShapeDtypeStruct((Np, F), jnp.float32),
        grid=(Np // tile_n,),
        in_specs=[
            pl.BlockSpec((tile_n, Np), lambda i: (i, 0)),     # adj rows (int8)
            pl.BlockSpec((1, Np), lambda i: (0, 0)),          # src-degree norm (shared)
            pl.BlockSpec((tile_n, 1), lambda i: (i, 0)),      # dst-degree norm rows
            pl.BlockSpec((Np, Fin), lambda i: (0, 0)),        # all source features (resident)
            pl.BlockSpec((tile_n, F), lambda i: (i, 0)),      # previous hidden rows
            pl.BlockSpec((Fin, F), lambda i: (0, 0)),         # W_gcn
            pl.BlockSpec((1, F), lambda i: (0, 0)),           # b_gcn
            pl.BlockSpec((F, 3 * F), lambda i: (0, 0)),       # W_ih  (r|z|n)
            pl.BlockSpec((1, 3 * F), lambda i: (0, 0)),       # b_ih
            pl.BlockSpec((F, 3 * F), lambda i: (0, 0)),       # W_hh
            pl.BlockSpec((1, 3 * F), lambda i: (0, 0)),       # b_hh
        ],
        out_specs=pl.BlockSpec((tile_n, F), lambda i: (i, 0)),
        # Row tiles are independent -> parallel (megacore-shardable on v7x).
        # VMEM per step is tiny (<1 MiB), so the default scoped limit is plenty.
        compiler_params=pltpu.CompilerParams(dimension_semantics=("parallel",)),
    )(adj_i8, dsrc, ddst, h_in, h_hid, Wg, bg, Wih, bih, Whh, bhh)


# -----------------------------------------------------------------------------
# Padding / parameter helpers
# -----------------------------------------------------------------------------
def _round_up(x, m):
    return ((x + m - 1) // m) * m


def _pad_axis(x, target, axis):
    pad = target - x.shape[axis]
    if pad <= 0:
        return x
    widths = [(0, 0)] * x.ndim
    widths[axis] = (0, pad)
    return jnp.pad(x, widths)


def _pad_gates(w, F, Fp, row_target=None):
    """Pad a (..., 3F) GRU gate tensor chunk-wise (r|z|n) to (..., 3Fp)."""
    chunks = [_pad_axis(w[..., i * F:(i + 1) * F], Fp, -1) for i in range(3)]
    w = jnp.concatenate(chunks, axis=-1)
    if row_target is not None:
        w = _pad_axis(w, row_target, 0)
    return w


def _pad_block_params(p, din_p, Fp):
    F = p["b_gcn"].shape[0]
    Wg = _pad_axis(_pad_axis(p["W_gcn"], Fp, 1), din_p, 0)
    bg = _pad_axis(p["b_gcn"][None, :], Fp, 1)
    Wih = _pad_gates(p["W_ih"], F, Fp, row_target=Fp)
    bih = _pad_gates(p["b_ih"][None, :], F, Fp)
    Whh = _pad_gates(p["W_hh"], F, Fp, row_target=Fp)
    bhh = _pad_gates(p["b_hh"][None, :], F, Fp)
    return Wg, bg, Wih, bih, Whh, bhh


def _degree_norm(adj):
    """DGL GraphConv norm='both' degree factors (0 for isolated nodes)."""
    a = adj.astype(jnp.float32)
    deg_in = a.sum(axis=1)      # in-degree of dst v   (adj[v, u] = edge u -> v)
    deg_out = a.sum(axis=0)     # out-degree of src u
    ddst = jnp.where(deg_in > 0, jax.lax.rsqrt(jnp.maximum(deg_in, 1.0)), 0.0)
    dsrc = jnp.where(deg_out > 0, jax.lax.rsqrt(jnp.maximum(deg_out, 1.0)), 0.0)
    return dsrc, ddst


# -----------------------------------------------------------------------------
# Full RecGCN forward
# -----------------------------------------------------------------------------
def recgcn_forward(adj, feat, params, *, tile_n=64):
    """adj: (N, N) dense 0/1 (adj[v, u]=1 iff edge u->v); feat: (N, in_feats)."""
    # TODO(synk): dropout omitted (eval mode / p = 0).
    N, Fin = feat.shape
    F = params[0]["b_gcn"].shape[0]

    Np = _round_up(N, 128)               # lane-dense adjacency + node padding
    assert Np % tile_n == 0, (Np, tile_n)
    Fin_p = _round_up(Fin, 128)
    Fp = _round_up(F, 128)

    dsrc, ddst = _degree_norm(adj)
    adj_i8 = _pad_axis(_pad_axis(adj.astype(jnp.int8), Np, 0), Np, 1)
    dsrc_p = _pad_axis(dsrc[None, :], Np, 1)
    ddst_p = _pad_axis(ddst[:, None], Np, 0)

    h = _pad_axis(_pad_axis(feat.astype(jnp.float32), Np, 0), Fin_p, 1)
    h_hid = jnp.zeros((Np, Fp), jnp.float32)     # GRUCell default hidden for first block

    for p in params:
        din_p = h.shape[1]
        Wg, bg, Wih, bih, Whh, bhh = _pad_block_params(p, din_p, Fp)
        h = _recgcn_block(adj_i8, dsrc_p, ddst_p, h, h_hid,
                          Wg, bg, Wih, bih, Whh, bhh, tile_n=tile_n)
        h_hid = h
    return h[:N, :F]


# -----------------------------------------------------------------------------
# Deterministic parameter init (matches the nn.Module shapes; W_ih/W_hh stored
# transposed so the kernel computes x @ W, gate chunk order r|z|n as in PyTorch)
# -----------------------------------------------------------------------------
def init_recgcn_params(key, in_feats, out_feats, num_blocks):
    params = []
    dim_in = in_feats
    F = out_feats
    for _ in range(num_blocks):
        key, *ks = jax.random.split(key, 7)
        params.append({
            "W_gcn": 0.1 * jax.random.normal(ks[0], (dim_in, F), jnp.float32),
            "b_gcn": 0.1 * jax.random.normal(ks[1], (F,), jnp.float32),
            "W_ih": 0.1 * jax.random.normal(ks[2], (F, 3 * F), jnp.float32),
            "b_ih": 0.1 * jax.random.normal(ks[3], (3 * F,), jnp.float32),
            "W_hh": 0.1 * jax.random.normal(ks[4], (F, 3 * F), jnp.float32),
            "b_hh": 0.1 * jax.random.normal(ks[5], (3 * F,), jnp.float32),
        })
        dim_in = F
    return params


# -----------------------------------------------------------------------------
# Pure-JAX reference (same math, unpadded) for a correctness check
# -----------------------------------------------------------------------------
def _ref_recgcn(adj, feat, params):
    dsrc, ddst = _degree_norm(adj)
    ahat = ddst[:, None] * adj.astype(jnp.float32) * dsrc[None, :]
    N = feat.shape[0]
    F = params[0]["b_gcn"].shape[0]
    h_gcn_in = feat.astype(jnp.float32)
    h_prev = jnp.zeros((N, F), jnp.float32)
    h = h_prev
    for p in params:
        x = (ahat @ h_gcn_in) @ p["W_gcn"] + p["b_gcn"][None, :]
        gi = x @ p["W_ih"] + p["b_ih"][None, :]
        gh = h_prev @ p["W_hh"] + p["b_hh"][None, :]
        r = jax.nn.sigmoid(gi[:, :F] + gh[:, :F])
        z = jax.nn.sigmoid(gi[:, F:2 * F] + gh[:, F:2 * F])
        n = jnp.tanh(gi[:, 2 * F:] + r * gh[:, 2 * F:])
        h_new = (1.0 - z) * n + z * h_prev
        h = jnp.where(h_new > 0, h_new, jnp.exp(jnp.minimum(h_new, 0.0)) - 1.0)
        h_gcn_in = h
        h_prev = h
    return h


# -----------------------------------------------------------------------------
# Main
# -----------------------------------------------------------------------------
if __name__ == "__main__":
    num_nodes = 80
    in_feats = 48
    out_feats = 32
    num_blocks = 3
    # dropout = 0.0 (eval mode)

    key = jax.random.PRNGKey(0)
    k_adj, k_feat, k_par = jax.random.split(key, 3)

    # Dense 0/1 adjacency with self-loops (so every node has in/out degree >= 1,
    # matching DGL GraphConv's zero-in-degree requirement).
    adj = (jax.random.uniform(k_adj, (num_nodes, num_nodes)) < 0.15).astype(jnp.float32)
    adj = jnp.maximum(adj, jnp.eye(num_nodes, dtype=jnp.float32))

    feat = jax.random.normal(k_feat, (num_nodes, in_feats), jnp.float32)
    params = init_recgcn_params(k_par, in_feats, out_feats, num_blocks)

    out = recgcn_forward(adj, feat, params, tile_n=64)
    out = jax.block_until_ready(out)

    ref = _ref_recgcn(adj, feat, params)
    assert out.shape == (num_nodes, out_feats), out.shape
    max_err = float(jnp.max(jnp.abs(out - ref)))
    assert jnp.allclose(out, ref, atol=2e-2, rtol=2e-2), max_err

    print("KERNEL_OK")
</pallas_src>

<mosaic_0001>
module attributes {stable_mosaic.version = 11 : i64} {
  func.func @recgcn_block_kernel(%arg0: i32, %arg1: memref<64x128xi8, #tpu.memory_space<vmem>>, %arg2: memref<1x128xf32, #tpu.memory_space<vmem>>, %arg3: memref<64x1xf32, #tpu.memory_space<vmem>>, %arg4: memref<128x128xf32, #tpu.memory_space<vmem>>, %arg5: memref<64x128xf32, #tpu.memory_space<vmem>>, %arg6: memref<128x128xf32, #tpu.memory_space<vmem>>, %arg7: memref<1x128xf32, #tpu.memory_space<vmem>>, %arg8: memref<128x384xf32, #tpu.memory_space<vmem>>, %arg9: memref<1x384xf32, #tpu.memory_space<vmem>>, %arg10: memref<128x384xf32, #tpu.memory_space<vmem>>, %arg11: memref<1x384xf32, #tpu.memory_space<vmem>>, %arg12: memref<64x128xf32, #tpu.memory_space<vmem>>) attributes {dimension_semantics = [#tpu.dimension_semantics<parallel>], iteration_bounds = array<i64: 2>, scalar_prefetch = 0 : i64, scratch_operands = 0 : i64, tpu.core_type = #tpu.core_type<tc>, window_params = [{transform_indices = @transform_0, window_bounds = array<i64: 64, 128>}, {pipeline_mode = #tpu.pipeline_mode<synchronous>, transform_indices = @transform_1, window_bounds = array<i64: 1, 128>}, {transform_indices = @transform_2, window_bounds = array<i64: 64, 1>}, {pipeline_mode = #tpu.pipeline_mode<synchronous>, transform_indices = @transform_3, window_bounds = array<i64: 128, 128>}, {transform_indices = @transform_4, window_bounds = array<i64: 64, 128>}, {pipeline_mode = #tpu.pipeline_mode<synchronous>, transform_indices = @transform_5, window_bounds = array<i64: 128, 128>}, {pipeline_mode = #tpu.pipeline_mode<synchronous>, transform_indices = @transform_6, window_bounds = array<i64: 1, 128>}, {pipeline_mode = #tpu.pipeline_mode<synchronous>, transform_indices = @transform_7, window_bounds = array<i64: 128, 384>}, {pipeline_mode = #tpu.pipeline_mode<synchronous>, transform_indices = @transform_8, window_bounds = array<i64: 1, 384>}, {pipeline_mode = #tpu.pipeline_mode<synchronous>, transform_indices = @transform_9, window_bounds = array<i64: 128, 384>}, {pipeline_mode = #tpu.pipeline_mode<synchronous>, transform_indices = @transform_10, window_bounds = array<i64: 1, 384>}, {transform_indices = @transform_11, window_bounds = array<i64: 64, 128>}]} {
    %c0 = arith.constant 0 : index
    %c0_0 = arith.constant 0 : index
    %0 = vector.load %arg1[%c0, %c0_0] : memref<64x128xi8, #tpu.memory_space<vmem>>, vector<64x128xi8>
    %1 = arith.sitofp %0 : vector<64x128xi8> to vector<64x128xf32>
    %c0_1 = arith.constant 0 : index
    %c0_2 = arith.constant 0 : index
    %2 = vector.load %arg2[%c0_1, %c0_2] : memref<1x128xf32, #tpu.memory_space<vmem>>, vector<1x128xf32>
    %3 = vector.broadcast %2 : vector<1x128xf32> to vector<64x128xf32>
    %4 = arith.mulf %1, %3 : vector<64x128xf32>
    %c0_3 = arith.constant 0 : index
    %c0_4 = arith.constant 0 : index
    %5 = vector.load %arg4[%c0_3, %c0_4] : memref<128x128xf32, #tpu.memory_space<vmem>>, vector<128x128xf32>
    %cst = arith.constant dense<0.000000e+00> : vector<64x128xf32>
    %6 = tpu.matmul %4, %5, %cst {dimension_numbers = #tpu.dot_dimension_numbers<[1], [0], [0], [1], [0, 0, 1, 1], [], []>} : vector<64x128xf32>, vector<128x128xf32>, vector<64x128xf32> -> vector<64x128xf32>
    %c0_5 = arith.constant 0 : index
    %c0_6 = arith.constant 0 : index
    %7 = vector.load %arg3[%c0_5, %c0_6] : memref<64x1xf32, #tpu.memory_space<vmem>>, vector<64x1xf32>
    %8 = vector.broadcast %7 : vector<64x1xf32> to vector<64x128xf32>
    %9 = arith.mulf %6, %8 : vector<64x128xf32>
    %c0_7 = arith.constant 0 : index
    %c0_8 = arith.constant 0 : index
    %10 = vector.load %arg6[%c0_7, %c0_8] : memref<128x128xf32, #tpu.memory_space<vmem>>, vector<128x128xf32>
    %cst_9 = arith.constant dense<0.000000e+00> : vector<64x128xf32>
    %11 = tpu.matmul %9, %10, %cst_9 {dimension_numbers = #tpu.dot_dimension_numbers<[1], [0], [0], [1], [0, 0, 1, 1], [], []>} : vector<64x128xf32>, vector<128x128xf32>, vector<64x128xf32> -> vector<64x128xf32>
    %c0_10 = arith.constant 0 : index
    %c0_11 = arith.constant 0 : index
    %12 = vector.load %arg7[%c0_10, %c0_11] : memref<1x128xf32, #tpu.memory_space<vmem>>, vector<1x128xf32>
    %13 = vector.broadcast %12 : vector<1x128xf32> to vector<64x128xf32>
    %14 = arith.addf %11, %13 : vector<64x128xf32>
    %c0_12 = arith.constant 0 : index
    %c0_13 = arith.constant 0 : index
    %15 = vector.load %arg5[%c0_12, %c0_13] : memref<64x128xf32, #tpu.memory_space<vmem>>, vector<64x128xf32>
    %c0_14 = arith.constant 0 : index
    %c0_15 = arith.constant 0 : index
    %16 = vector.load %arg8[%c0_14, %c0_15] : memref<128x384xf32, #tpu.memory_space<vmem>>, vector<128x384xf32>
    %cst_16 = arith.constant dense<0.000000e+00> : vector<64x384xf32>
    %17 = tpu.matmul %14, %16, %cst_16 {dimension_numbers = #tpu.dot_dimension_numbers<[1], [0], [0], [1], [0, 0, 1, 1], [], []>} : vector<64x128xf32>, vector<128x384xf32>, vector<64x384xf32> -> vector<64x384xf32>
    %c0_17 = arith.constant 0 : index
    %c0_18 = arith.constant 0 : index
    %18 = vector.load %arg9[%c0_17, %c0_18] : memref<1x384xf32, #tpu.memory_space<vmem>>, vector<1x384xf32>
    %19 = vector.broadcast %18 : vector<1x384xf32> to vector<64x384xf32>
    %20 = arith.addf %17, %19 : vector<64x384xf32>
    %c0_19 = arith.constant 0 : index
    %c0_20 = arith.constant 0 : index
    %21 = vector.load %arg10[%c0_19, %c0_20] : memref<128x384xf32, #tpu.memory_space<vmem>>, vector<128x384xf32>
    %cst_21 = arith.constant dense<0.000000e+00> : vector<64x384xf32>
    %22 = tpu.matmul %15, %21, %cst_21 {dimension_numbers = #tpu.dot_dimension_numbers<[1], [0], [0], [1], [0, 0, 1, 1], [], []>} : vector<64x128xf32>, vector<128x384xf32>, vector<64x384xf32> -> vector<64x384xf32>
    %c0_22 = arith.constant 0 : index
    %c0_23 = arith.constant 0 : index
    %23 = vector.load %arg11[%c0_22, %c0_23] : memref<1x384xf32, #tpu.memory_space<vmem>>, vector<1x384xf32>
    %24 = vector.broadcast %23 : vector<1x384xf32> to vector<64x384xf32>
    %25 = arith.addf %22, %24 : vector<64x384xf32>
    %26 = vector.extract_strided_slice %20 {offsets = [0, 0], sizes = [64, 128], strides = [1, 1]} : vector<64x384xf32> to vector<64x128xf32>
    %27 = vector.extract_strided_slice %25 {offsets = [0, 0], sizes = [64, 128], strides = [1, 1]} : vector<64x384xf32> to vector<64x128xf32>
    %28 = arith.addf %26, %27 : vector<64x128xf32>
    %cst_24 = arith.constant 0.000000e+00 : f32
    %29 = vector.broadcast %cst_24 : f32 to vector<64x128xf32>
    %30 = arith.subf %29, %28 : vector<64x128xf32>
    %31 = math.exp %30 : vector<64x128xf32>
    %cst_25 = arith.constant 1.000000e+00 : f32
    %32 = vector.broadcast %cst_25 : f32 to vector<64x128xf32>
    %33 = arith.addf %32, %31 : vector<64x128xf32>
    %cst_26 = arith.constant 1.000000e+00 : f32
    %34 = vector.broadcast %cst_26 : f32 to vector<64x128xf32>
    %35 = arith.divf %34, %33 : vector<64x128xf32>
    %36 = vector.extract_strided_slice %20 {offsets = [0, 128], sizes = [64, 128], strides = [1, 1]} : vector<64x384xf32> to vector<64x128xf32>
    %37 = vector.extract_strided_slice %25 {offsets = [0, 128], sizes = [64, 128], strides = [1, 1]} : vector<64x384xf32> to vector<64x128xf32>
    %38 = arith.addf %36, %37 : vector<64x128xf32>
    %cst_27 = arith.constant 0.000000e+00 : f32
    %39 = vector.broadcast %cst_27 : f32 to vector<64x128xf32>
    %40 = arith.subf %39, %38 : vector<64x128xf32>
    %41 = math.exp %40 : vector<64x128xf32>
    %cst_28 = arith.constant 1.000000e+00 : f32
    %42 = vector.broadcast %cst_28 : f32 to vector<64x128xf32>
    %43 = arith.addf %42, %41 : vector<64x128xf32>
    %cst_29 = arith.constant 1.000000e+00 : f32
    %44 = vector.broadcast %cst_29 : f32 to vector<64x128xf32>
    %45 = arith.divf %44, %43 : vector<64x128xf32>
    %46 = vector.extract_strided_slice %20 {offsets = [0, 256], sizes = [64, 128], strides = [1, 1]} : vector<64x384xf32> to vector<64x128xf32>
    %47 = vector.extract_strided_slice %25 {offsets = [0, 256], sizes = [64, 128], strides = [1, 1]} : vector<64x384xf32> to vector<64x128xf32>
    %48 = arith.mulf %35, %47 : vector<64x128xf32>
    %49 = arith.addf %46, %48 : vector<64x128xf32>
    %50 = math.tanh %49 : vector<64x128xf32>
    %cst_30 = arith.constant 1.000000e+00 : f32
    %51 = vector.broadcast %cst_30 : f32 to vector<64x128xf32>
    %52 = arith.subf %51, %45 : vector<64x128xf32>
    %53 = arith.mulf %52, %50 : vector<64x128xf32>
    %54 = arith.mulf %45, %15 : vector<64x128xf32>
    %55 = arith.addf %53, %54 : vector<64x128xf32>
    %cst_31 = arith.constant 0.000000e+00 : f32
    %56 = vector.broadcast %cst_31 : f32 to vector<64x128xf32>
    %57 = arith.cmpf ogt, %55, %56 : vector<64x128xf32>
    %cst_32 = arith.constant 0.000000e+00 : f32
    %58 = vector.broadcast %cst_32 : f32 to vector<64x128xf32>
    %59 = arith.minimumf %55, %58 : vector<64x128xf32>
    %60 = math.exp %59 : vector<64x128xf32>
    %cst_33 = arith.constant 1.000000e+00 : f32
    %61 = vector.broadcast %cst_33 : f32 to vector<64x128xf32>
    %62 = arith.subf %60, %61 : vector<64x128xf32>
    %63 = arith.select %57, %55, %62 : vector<64x128xi1>, vector<64x128xf32>
    %c0_34 = arith.constant 0 : index
    %c0_35 = arith.constant 0 : index
    %64 = vector.load %arg12[%c0_34, %c0_35] : memref<64x128xf32, #tpu.memory_space<vmem>>, vector<64x128xf32>
    tpu.vector_store %arg12[%c0_34, %c0_35], %63 {strides = array<i32>} : memref<64x128xf32, #tpu.memory_space<vmem>>, vector<64x128xf32>,
    return
  }
  func.func @transform_0(%arg0: i32) -> (i32, i32) {
    %c0_i32 = arith.constant 0 : i32
    %c0_i32_0 = arith.constant 0 : i32
    return %arg0, %c0_i32 : i32, i32
  }
  func.func @transform_1(%arg0: i32) -> (i32, i32) {
    %c0_i32 = arith.constant 0 : i32
    %c0_i32_0 = arith.constant 0 : i32
    %c0_i32_1 = arith.constant 0 : i32
    return %c0_i32, %c0_i32_0 : i32, i32
  }
  func.func @transform_2(%arg0: i32) -> (i32, i32) {
    %c0_i32 = arith.constant 0 : i32
    %c0_i32_0 = arith.constant 0 : i32
    return %arg0, %c0_i32 : i32, i32
  }
  func.func @transform_3(%arg0: i32) -> (i32, i32) {
    %c0_i32 = arith.constant 0 : i32
    %c0_i32_0 = arith.constant 0 : i32
    %c0_i32_1 = arith.constant 0 : i32
    return %c0_i32, %c0_i32_0 : i32, i32
  }
  func.func @transform_4(%arg0: i32) -> (i32, i32) {
    %c0_i32 = arith.constant 0 : i32
    %c0_i32_0 = arith.constant 0 : i32
    return %arg0, %c0_i32 : i32, i32
  }
  func.func @transform_5(%arg0: i32) -> (i32, i32) {
    %c0_i32 = arith.constant 0 : i32
    %c0_i32_0 = arith.constant 0 : i32
    %c0_i32_1 = arith.constant 0 : i32
    return %c0_i32, %c0_i32_0 : i32, i32
  }
  func.func @transform_6(%arg0: i32) -> (i32, i32) {
    %c0_i32 = arith.constant 0 : i32
    %c0_i32_0 = arith.constant 0 : i32
    %c0_i32_1 = arith.constant 0 : i32
    return %c0_i32, %c0_i32_0 : i32, i32
  }
  func.func @transform_7(%arg0: i32) -> (i32, i32) {
    %c0_i32 = arith.constant 0 : i32
    %c0_i32_0 = arith.constant 0 : i32
    %c0_i32_1 = arith.constant 0 : i32
    return %c0_i32, %c0_i32_0 : i32, i32
  }
  func.func @transform_8(%arg0: i32) -> (i32, i32) {
    %c0_i32 = arith.constant 0 : i32
    %c0_i32_0 = arith.constant 0 : i32
    %c0_i32_1 = arith.constant 0 : i32
    return %c0_i32, %c0_i32_0 : i32, i32
  }
  func.func @transform_9(%arg0: i32) -> (i32, i32) {
    %c0_i32 = arith.constant 0 : i32
    %c0_i32_0 = arith.constant 0 : i32
    %c0_i32_1 = arith.constant 0 : i32
    return %c0_i32, %c0_i32_0 : i32, i32
  }
  func.func @transform_10(%arg0: i32) -> (i32, i32) {
    %c0_i32 = arith.constant 0 : i32
    %c0_i32_0 = arith.constant 0 : i32
    %c0_i32_1 = arith.constant 0 : i32
    return %c0_i32, %c0_i32_0 : i32, i32
  }
  func.func @transform_11(%arg0: i32) -> (i32, i32) {
    %c0_i32 = arith.constant 0 : i32
    %c0_i32_0 = arith.constant 0 : i32
    return %arg0, %c0_i32 : i32, i32
  }
}

</mosaic_0001>

<bundles_post_ra>
// kernel: tpu_custom_call.1
= control target key start
LH: loop header
LB: loop body
LE: loop exit
PB: predicated region body
PF: predicated region fallthrough
CT: control target
= control target key end

     0   :  { %s3460_s0 = inlined_call_operand.hbm [shape: s8[128,128], index: 0, kind: input, shape index: {}]   ;;  %s3461_s1 = inlined_call_operand.vmem [shape: f32[1,128], index: 1, kind: input, shape index: {}]   ;;  %s3462_s2 = inlined_call_operand.vmem [shape: f32[128,1], index: 2, kind: input, shape index: {}]   ;;  %s3463_s3 = inlined_call_operand.vmem [shape: f32[128,128], index: 3, kind: input, shape index: {}]   ;;  %s3464_s4 = inlined_call_operand.hbm [shape: f32[128,128], index: 4, kind: input, shape index: {}]   ;;  %s3465_s5 = inlined_call_operand.hbm [shape: f32[128,128], index: 5, kind: input, shape index: {}]   ;;  %s3466_s6 = inlined_call_operand.vmem [shape: f32[1,128], index: 6, kind: input, shape index: {}]   ;;  %s3467_s7 = inlined_call_operand.hbm [shape: f32[128,384], index: 7, kind: input, shape index: {}]   ;;  %s3468_s8 = inlined_call_operand.vmem [shape: f32[1,384], index: 8, kind: input, shape index: {}]   ;;  %s3469_s9 = inlined_call_operand.hbm [shape: f32[128,384], index: 9, kind: input, shape index: {}]   ;;  %s3470_s10 = inlined_call_operand.vmem [shape: f32[1,384], index: 10, kind: input, shape index: {}]   ;;  %s3471_s11 = inlined_call_operand.hbm [shape: f32[128,128], index: 11, kind: output, shape index: {}]  }
   0x1   :  { %3482 = sst [smem:[#allocation19_spill]] %s3460_s0 }
   0x2   :  { %3483 = sst [smem:[#allocation20_spill]] %s3465_s5 }
   0x3   :  { %3484 = sst [smem:[#allocation21_spill]] %s3467_s7 }
   0x4   :  { %3485 = sst [smem:[#allocation22_spill]] %s3468_s8 }
   0x5   :  { %3486 = sst [smem:[#allocation23_spill]] %s3469_s9 }
   0x6   :  { %3487 = sst [smem:[#allocation24_spill]] %s3470_s10 }
   0x7   :  { %3488 = sst [smem:[#allocation25_spill]] %s3471_s11 }
   0x8   :  { %16 = vsyncpa [#allocation3], 0 }
   0x9   :  { %18 = vsyncpa [#allocation3 + $0x1], 0 }
   0xa   :  { %19 = vsyncpa [#allocation6], 0 }
   0xb   :  { %21 = vsyncpa [#allocation6 + $0x1], 0 }
   0xc   :  { %22 = vsyncpa [#allocation9], 0 }
   0xd   :  { %23 = vsyncpa [#allocation4], 0 }
   0xe   :  { %25 = vsyncpa [#allocation4 + $0x1], 0  ;;  %s2836_s17 = smov 0   ;;  %s2838_s18 = smov 0  }
   0xf   :  { %s2840_s19 = smov 0   ;;  %s2842_s20 = smov 0  }
  0x10 LB: > { %3489 = sst [smem:[#allocation17_spill]] %s2748_s17  ;;  %s2857_s21 = sadd.s32 4294967295, %s2760_s20   ;;  %s2760_s20 = sphi %s2842_s20, %s3522_s20   ;;  %s2756_s19 = sphi %s2840_s19, %s3521_s19   ;;  %s2752_s18 = sphi %s2838_s18, %s3520_s18   ;;  %s2748_s17 = sphi %s2836_s17, %s3519_s17  }
  0x11   : > { %s1799_s22 = sadd.s32 4294967294, %s2760_s20   ;;  %p51_p0 = scmp.ne.s32.totalorder %s2752_s18, %s2748_s17 }
  0x12   : > { %p3472_p1 = scmp.eq.s32.totalorder %s2857_s21, 0  ;;  %p301_p3 = scmp.eq.s32.totalorder %s1799_s22, 1 }
  0x13   : > { %p1800_p5 = scmp.ge.s32.totalorder %s2760_s20, 1  ;;  %p308_p7 = scmp.lt.s32.totalorder %s2760_s20, 3 }
  0x14   : > { %p2866_p4 = por %p3472_p1, %p51_p0  ;;  %p2871_p6 = por %p301_p3, %p51_p0 }
  0x15   : > { %p2876_p8 = pnand %p1800_p5, %p308_p7  ;;  %s2762_s26 = smov [#allocation7]  }
  0x16   : > { %s3490_s23 = scalar_select %p2866_p4, 1, 0 }
  0x17   : > { %s3491_s24 = scalar_select %p2871_p6, 1, 0 }
  0x18   : > { %s3493_s25 = scalar_select %p2876_p8, 1, 0 }
  0x19   : > { %3492 = sst [smem:[#allocation18_spill]] %s3491_s24  ;;  %s326_s27 = sshll.u32 %s2762_s26, 4  ;;  %s2880_s27 = int_to_ptr.vmem [resolvable:$true] %s326_s27 }
  0x1a   : > { %p2368_p9 = pneg %p2876_p8  ;;  %s2763_s29 = smov [#allocation8]  }
  0x1b   : > { %s342_s30 = sshll.u32 %s2763_s29, 4  ;;  %s3495_s5 = sld [smem:[#allocation20_spill]]  ;;  %s2891_s30 = int_to_ptr.vmem [resolvable:$true] %s342_s30 }
  0x1c   : > { %p2887_p11 = pnand %p2368_p9, %p3472_p1 }
  0x1e   : > { %p2901_p13 = pneg %p2887_p11 }
  0x21   : > { %s2538_s14 = scalar_lea.hbm %s3495_s5, 2048 }
  0x22   : > { %p2539_p12 = scmp.ne.s32.totalorder %s3495_s5, %s2538_s14  ;;  %p2545_p5 = scmp.lt.u32.totalorder %s2538_s14, %s3495_s5 }
  0x24   : > { %p2541_p0 = pnand %p2901_p13, %p2539_p12 }
  0x26   : > { %p2542_p3 = pneg %p2541_p0 }
  0x28   : > { %p2547_p7 = pnand %p2545_p5, %p2542_p3 }
  0x2a   : > { %2550 = shalt.err (!%p2547_p7)
}
  0x2b   : > { %s2551_s12 = scalar_lea.vmem %s2880_s27, 2048  ;;  %p2559_p2 = scmp.lt.s32.totalorder %s2880_s27, %s2880_s27 }
  0x2c   : > { %p2552_p9 = scmp.ne.s32.totalorder %s2880_s27, %s2551_s12  ;;  %p2560_p6 = scmp.lt.s32.totalorder %s2551_s12, %s2551_s12 }
  0x2e   : > { %p2554_p10 = pnand %p2552_p9, %p2901_p13  ;;  %p2561_p12 = por %p2560_p6, %p2559_p2 }
  0x30   : > { %p2555_p1 = pneg %p2554_p10 }
  0x32   : > { %p2562_p0 = pnand %p2561_p12, %p2555_p1 }
  0x34   : > { %2565 = shalt.err (!%p2562_p0)
}
  0x35   : > { %s3476_s13 = smov 128   ;;  %s3478_s14 = smov 8  }
  0x36   : > { %2371 = dma.hbm_to_vmem [thread:$0]  (!%p2887_p11), %s3495_s5, 2048, %s2880_s27, [#allocation6], %s3476_s13, %s3476_s13, %s3478_s14  }
  0x37   : > { %s3497_s7 = sld [smem:[#allocation21_spill]] }
  0x3d   : > { %s2566_s12 = scalar_lea.hbm %s3497_s7, 6144 }
  0x3e   : > { %p2567_p1 = scmp.ne.s32.totalorder %s3497_s7, %s2566_s12  ;;  %p2573_p10 = scmp.lt.u32.totalorder %s2566_s12, %s3497_s7 }
  0x40   : > { %p2569_p2 = pnand %p2567_p1, %p2901_p13 }
  0x42   : > { %p2570_p6 = pneg %p2569_p2 }
  0x44   : > { %p2575_p3 = pnand %p2573_p10, %p2570_p6 }
  0x46   : > { %2578 = shalt.err (!%p2575_p3)
}
  0x47   : > { %s2579_s27 = scalar_lea.vmem %s2891_s30, 6144  ;;  %p2587_p12 = scmp.lt.s32.totalorder %s2891_s30, %s2891_s30 }
  0x48   : > { %p2580_p5 = scmp.ne.s32.totalorder %s2891_s30, %s2579_s27  ;;  %p2588_p0 = scmp.lt.s32.totalorder %s2579_s27, %s2579_s27 }
  0x4a   : > { %p2582_p7 = pnand %p2580_p5, %p2901_p13  ;;  %p2589_p1 = por %p2588_p0, %p2587_p12 }
  0x4c   : > { %p2583_p9 = pneg %p2582_p7 }
  0x4e   : > { %p2590_p2 = pnand %p2589_p1, %p2583_p9 }
  0x50   : > { %2593 = shalt.err (!%p2590_p2)
}
  0x51   : > { %s2766_s17 = smov 384   ;;  %s2767_s8 = smov 24  }
  0x52   : > { %2374 = dma.hbm_to_vmem [thread:$0]  (!%p2887_p11), %s3497_s7, 6144, %s2891_s30, [#allocation9], %s2766_s17, %s2766_s17, %s2767_s8  }
  0x53   : > { %s2768_s15 = smov [#allocation10]   ;;  %s2949_s26 = sadd.s32 1, %s2760_s20  }
  0x54   : > { %s358_s16 = sshll.u32 %s2768_s15, 4  ;;  %s3498_s9 = sld [smem:[#allocation23_spill]]  ;;  %s359_s16 = int_to_ptr.vmem [resolvable:$true] %s358_s16 }
  0x5a   : > { %s2594_s27 = scalar_lea.hbm %s3498_s9, 6144 }
  0x5b   : > { %p2595_p6 = scmp.ne.s32.totalorder %s3498_s9, %s2594_s27  ;;  %p2601_p5 = scmp.lt.u32.totalorder %s2594_s27, %s3498_s9 }
  0x5d   : > { %p2597_p10 = pnand %p2595_p6, %p2901_p13 }
  0x5f   : > { %p2598_p3 = pneg %p2597_p10 }
  0x61   : > { %p2603_p7 = pnand %p2601_p5, %p2598_p3 }
  0x63   : > { %2606 = shalt.err (!%p2603_p7)
}
  0x64   : > { %s2607_s30 = scalar_lea.vmem %s359_s16, 6144  ;;  %p2615_p1 = scmp.lt.s32.totalorder %s359_s16, %s359_s16 }
  0x65   : > { %p2608_p9 = scmp.ne.s32.totalorder %s359_s16, %s2607_s30  ;;  %p2616_p2 = scmp.lt.s32.totalorder %s2607_s30, %s2607_s30 }
  0x67   : > { %p2610_p12 = pnand %p2608_p9, %p2901_p13  ;;  %p2617_p4 = por %p2616_p2, %p2615_p1 }
  0x69   : > { %p2611_p0 = pneg %p2610_p12 }
  0x6b   : > { %p2618_p8 = pnand %p2617_p4, %p2611_p0 }
  0x6d   : > { %2621 = shalt.err (!%p2618_p8)
}
  0x6e   : > { %2377 = dma.hbm_to_vmem [thread:$0]  (!%p2887_p11), %s3498_s9, 6144, %s359_s16, [#allocation9], %s2766_s17, %s2766_s17, %s2767_s8  }
  0x6f   : > { %s35_s5 = ssub.s32 %s2760_s20, %s2949_s26  ;;  %s38_s10 = sadd.s32 1, %s2756_s19 }
  0x70   : > { %p36_p4 = scmp.eq.s32.totalorder %s35_s5, 0  ;;  %p45_p8 = scmp.ne.s32.totalorder %s2756_s19, %s2752_s18 }
  0x71   : > { %p46_p13 = scmp.eq.s32.totalorder %s2760_s20, 0  ;;  %p2392_p6 = scmp.lt.s32.totalorder %s2760_s20, 2 }
  0x72   : > { %s2977_s28 = scalar_select %p36_p4, %s2756_s19, %s38_s10  }
  0x73   : > { %p47_p10 = por %p46_p13, %p45_p8  ;;  %p3499_p3 = scmp.eq.s32.totalorder %s2857_s21, 1 }
  0x74   : > { %s2986_s11 = sand.u32 1, %s2756_s19   ;;  %s1835_s17 = sshll.u32 %s2760_s20, 8 }
  0x75   : > { %p2981_p5 = por %p3499_p3, %p45_p8  ;;  %s1805_s8 = sshll.u32 %s2986_s11, 4 }
  0x76   : > { %s3501_s0 = sld [smem:[#allocation19_spill]]  ;;  %s379_s29 = scalar_lea.vmem [#allocation2], %s1805_s8 }
  0x77   : > { %s386_s12 = sshll.u32 %s379_s29, 4  ;;  %p2995_p11 = pnand %p2392_p6, %p47_p10  ;;  %s2999_s12 = int_to_ptr.vmem [resolvable:$true] %s386_s12 }
  0x78   : > { %s376_s13 = scalar_lea.sflag [#allocation3], %s2986_s11 }
  0x79   : > { %p2624_p9 = pneg %p2995_p11 }
  0x7c   : > { %s2993_s16 = scalar_lea.hbm %s3501_s0, %s1835_s17  ;;  %s2627_s17 = scalar_lea.hbm %s3501_s0, 512 }
  0x7d   : > { %s2622_s14 = scalar_lea.hbm %s2993_s16, 256  ;;  %p2628_p1 = scmp.lt.u32.totalorder %s2993_s16, %s3501_s0 }
  0x7e   : > { %p2623_p7 = scmp.ne.s32.totalorder %s2993_s16, %s2622_s14  ;;  %p2629_p2 = scmp.lt.u32.totalorder %s2627_s17, %s2622_s14 }
  0x7f   : > { %p2631_p8 = scmp.lt.u32.totalorder %s2622_s14, %s2993_s16 }
  0x80   : > { %p2625_p12 = pnand %p2624_p9, %p2623_p7  ;;  %p2630_p4 = por %p2629_p2, %p2628_p1 }
  0x82   : > { %p2626_p0 = pneg %p2625_p12  ;;  %p2632_p13 = por %p2631_p8, %p2630_p4 }
  0x84   : > { %p2633_p6 = pnand %p2632_p13, %p2626_p0 }
  0x86   : > { %2636 = shalt.err (!%p2633_p6)
}
  0x87   : > { %s2637_s15 = scalar_lea.vmem %s2999_s12, 256  ;;  %s2769_s29 = smov [#allocation2]  }
  0x88   : > { %p2638_p10 = scmp.ne.s32.totalorder %s2999_s12, %s2637_s15  ;;  %s2642_s5 = sshll.u32 %s2769_s29, 4  ;;  %s2643_s5 = int_to_ptr.vmem [resolvable:$false] %s2642_s5 }
  0x89   : > { %s2644_s10 = scalar_lea.vmem %s2643_s5, 512  ;;  %p2645_p12 = scmp.lt.s32.totalorder %s2999_s12, %s2643_s5 }
  0x8a   : > { %p2640_p3 = pnand %p2638_p10, %p2624_p9  ;;  %p2646_p1 = scmp.lt.s32.totalorder %s2644_s10, %s2637_s15 }
  0x8c   : > { %p2641_p7 = pneg %p2640_p3  ;;  %p2647_p2 = por %p2646_p1, %p2645_p12 }
  0x8e   : > { %p2648_p4 = pnand %p2647_p2, %p2641_p7 }
  0x90   : > { %2651 = shalt.err (!%p2648_p4)
}
  0x91   : > { %s3503_s14 = smov 8   ;;  %s3504_s17 = smov 128  }
  0x92   : > { %2381 = dma.hbm_to_vmem [thread:$0]  (!%p2995_p11), %s2993_s16, 256, %s2999_s12, %s376_s13, %s3504_s17, %s3504_s17, %s3503_s14  }
  0x93   : > { %s1808_s8 = sshll.u32 %s2986_s11, 6  ;;  %s1836_s24 = sshll.u32 %s2760_s20, 10 }
  0x94   : > { %s3038_s5 = scalar_lea.hbm %s3464_s4, %s1836_s24  ;;  %s409_s10 = scalar_lea.vmem [#allocation5], %s1808_s8 }
  0x95   : > { %s416_s30 = sshll.u32 %s409_s10, 4  ;;  %s3505_s0 = sand.u32 1, %s2760_s20   ;;  %s3040_s30 = int_to_ptr.vmem [resolvable:$true] %s416_s30 }
  0x96   : > { %s3044_s7 = scalar_lea.sflag [#allocation6], %s3505_s0  ;;  %s2652_s9 = scalar_lea.hbm %s3038_s5, 1024 }
  0x97   : > { %p2653_p0 = scmp.ne.s32.totalorder %s3038_s5, %s2652_s9  ;;  %s2657_s12 = scalar_lea.hbm %s3464_s4, 2048 }
  0x98   : > { %p2658_p6 = scmp.lt.u32.totalorder %s3038_s5, %s3464_s4  ;;  %p2659_p10 = scmp.lt.u32.totalorder %s2657_s12, %s2652_s9 }
  0x99   : > { %p2655_p8 = pnand %p2653_p0, %p2624_p9  ;;  %p2661_p7 = scmp.lt.u32.totalorder %s2652_s9, %s3038_s5 }
  0x9a   : > { %p2660_p3 = por %p2659_p10, %p2658_p6 }
  0x9b   : > { %p2656_p13 = pneg %p2655_p8 }
  0x9c   : > { %p2662_p12 = por %p2661_p7, %p2660_p3 }
  0x9e   : > { %p2663_p1 = pnand %p2662_p12, %p2656_p13 }
  0xa0   : > { %2666 = shalt.err (!%p2663_p1)
}
  0xa1   : > { %s2667_s0 = scalar_lea.vmem %s3040_s30, 1024  ;;  %s2770_s8 = smov [#allocation5]  }
  0xa2   : > { %p2668_p2 = scmp.ne.s32.totalorder %s3040_s30, %s2667_s0  ;;  %s2672_s15 = sshll.u32 %s2770_s8, 4  ;;  %s2673_s15 = int_to_ptr.vmem [resolvable:$false] %s2672_s15 }
  0xa3   : > { %s2674_s29 = scalar_lea.vmem %s2673_s15, 2048  ;;  %p2675_p8 = scmp.lt.s32.totalorder %s3040_s30, %s2673_s15 }
  0xa4   : > { %p2670_p4 = pnand %p2668_p2, %p2624_p9  ;;  %p2676_p6 = scmp.lt.s32.totalorder %s2674_s29, %s2667_s0 }
  0xa6   : > { %p2671_p0 = pneg %p2670_p4  ;;  %p2677_p10 = por %p2676_p6, %p2675_p8 }
  0xa8   : > { %p2678_p3 = pnand %p2677_p10, %p2671_p0 }
  0xaa   : > { %2681 = shalt.err (!%p2678_p3)
}
  0xab   : > { %2384 = dma.hbm_to_vmem [thread:$0]  (!%p2995_p11), %s3038_s5, 1024, %s3040_s30, %s3044_s7, %s3504_s17, %s3504_s17, %s3503_s14  }
  0xac   : > { %p3506_p9 = scmp.ne.s32.totalorder %s3493_s25, 0 }
  0xad   : > { %s3076_s9 = sand.u32 (!%p3506_p9), 1, %s2752_s18   ;;  %p3507_p13 = scmp.ne.s32.totalorder (!%p3506_p9), %s3490_s23, 0 }
  0xae   : > { %428 = sbr.rel (%p3506_p9) target bundleno = 1014 (0x3f6), region = 64  ;;  %s1812_s10 = sshll.u32 (!%p3506_p9), %s3076_s9, 4 }
  0xaf   : > { %s431_s11 = scalar_lea.sflag (!%p3506_p9), [#allocation3], %s3076_s9  ;;  %s3080_s16 = scalar_lea.vmem (!%p3506_p9), [#allocation2], %s1812_s10 }
  0xb5   : > { %2727 = dma.done.wait (%p3507_p13), %s431_s11, 256  }
  0xb6   : > { %2729 = vsyncadd (%p3507_p13), %s431_s11, 4294967040  ;;  %s439_s7 = sand.u32 1, %s2857_s21   ;;  %s1813_s25 = sshll.u32 %s3076_s9, 6 }
  0xb7   : > { %s440_s27 = scalar_lea.sflag [#allocation6], %s439_s7  ;;  %s3090_s30 = scalar_lea.vmem [#allocation5], %s1813_s25 }
  0xb8   : > { %2731 = dma.done.wait (%p3507_p13), %s440_s27, 1024  }
  0xb9   : > { %2733 = vsyncadd (%p3507_p13), %s440_s27, 4294966272  ;;  %p3508_p11 = scmp.eq.s32.totalorder %s2857_s21, 0 }
  0xbb   : > { %2735 = dma.done.wait (%p3508_p11), [#allocation6], 2048   ;;  %p3509_p7 = pmov %p3508_p11 }
  0xbd   : > { %2737 = vsyncadd (%p3509_p7), [#allocation6], 4294965248  ;;  %p3510_p12 = pmov %p3509_p7 }
  0xbe   : > { %p3511_p1 = pmov %p3509_p7 }
  0xbf   : > { %2739 = dma.done.wait (%p3510_p12), [#allocation9], 12288  }
  0xc0   : > { %2741 = vsyncadd (%p3511_p1), [#allocation9], 4294955008  ;;  %s1818_s14 = sshll.u32 %s2857_s21, 3  ;;  %v2771_v0 = vmov 0   ;;  %v546_v1 = vld [vmem:[%s3463_s3] sm:$0xff]  ;;  %v547_v2 = vld [vmem:[%s3463_s3 + $0x8] sm:$0xff] }
  0xc1   : > { %2440 = vset.pattern.permute.xlu0 %v2771_v0  ;;  %p506_p2 = scmp.lt.s32.totalorder %s1818_s14, 15  ;;  %2441 = vset.pattern.permute.xlu1 %v2771_v0  ;;  %v548_v3 = vld [vmem:[%s3463_s3 + $0x10] sm:$0xff]  ;;  %v2110_v4 = vpack.c.bf16 %v547_v2, %v546_v1  ;;  %v549_v5 = vld [vmem:[%s3463_s3 + $0x18] sm:$0xff]  ;;  %v550_v7 = vld [vmem:[%s3463_s3 + $0x20] sm:$0xff]  ;;  %s3512_s10 = sld [smem:[#allocation24_spill]] }
  0xc2   : > { %v2114_v6 = vpack.c.bf16 %v549_v5, %v548_v3  ;;  %v551_v8 = vld [vmem:[%s3463_s3 + $0x28] sm:$0xff]  ;;  %v3129_v10 = vld [vmem:[%s3080_s16] sm:$0xff]  ;;  %v553_v12 = vld [vmem:[%s3463_s3 + $0x38] sm:$0xff]  ;;  %s3513_s27 = sld [smem:[#allocation22_spill]]  ;;  %s3392_s23 = scalar_lea.vmem [#allocation11], %s1813_s25 }
  0xc3   : > { %s3524_s14 = smov (!%p506_p2, %s1818_s14), 15  ;;  %2111 = vmatprep.subr.bf16.mxu0 %v2110_v4  ;;  %v2118_v9 = vpack.c.bf16 %v551_v8, %v550_v7  ;;  %v552_v11 = vld [vmem:[%s3463_s3 + $0x30] sm:$0xff]  ;;  %v515_v13 = vunpack.c.0.s8 %v3129_v10  ;;  %v3142_v15 = vld [vmem:[%s3461_s1] ss:$0 sm:$0xff]  ;;  %v724_v22 = vld [vmem:[#allocation7 + $0x8] sm:$0xff]  ;;  %v516_v51 = vunpack.c.1.s8 %v3129_v10  ;;  %v517_v52 = vunpack.c.2.s8 %v3129_v10  ;;  %s1837_s25 = sshll.u32 %s2857_s21, 10 }
  0xc4   : > { %s1819_s0 = sshll.u32 %s3524_s14, 3  ;;  %2113 = vmatpush3.bf16.msra.mxu0 %v2110_v4  ;;  %v554_v17 = vld [vmem:[%s3463_s3 + $0x40] sm:$0xff]  ;;  %v2122_v20 = vpack.c.bf16 %v553_v12, %v552_v11  ;;  %v725_v23 = vld [vmem:[#allocation7 + $0x10] sm:$0xff]  ;;  %v555_v24 = vld [vmem:[%s3463_s3 + $0x48] sm:$0xff]  ;;  %v518_v59 = vunpack.c.3.s8 %v3129_v10  ;;  %s1663_s14 = sshll.u32 %s3392_s23, 4  ;;  %s3415_s14 = int_to_ptr.vmem [resolvable:$true] %s1663_s14 }
  0xc5   : > { %s3126_s17 = scalar_lea.vmem %s3462_s2, %s1819_s0  ;;  %2115 = vmatprep.subr.bf16.mxu0 %v2114_v6  ;;  %v523_v18 = vcvt.s32.f32 %v515_v13  ;;  %v723_v21 = vld [vmem:[#allocation7] sm:$0xff]  ;;  %v726_v27 = vld [vmem:[#allocation7 + $0x18] sm:$0xff]  ;;  %v2126_v31 = vpack.c.bf16 %v555_v24, %v554_v17  ;;  %v728_v33 = vld [vmem:[#allocation7 + $0x28] sm:$0xff]  ;;  %v524_v58 = vcvt.s32.f32 %v516_v51  ;;  %v525_v60 = vcvt.s32.f32 %v517_v52  ;;  %s3514_s13 = sld [smem:[#allocation25_spill]] }
  0xc6   : > { %v667_v14 = vld [vmem:[%s3126_s17] sm:$0xff]  ;;  %v669_v16 = vld [vmem:[%s3126_s17 + $0x10] sm:$0xff]  ;;  %v668_v19 = vld [vmem:[%s3126_s17 + $0x8] sm:$0xff]  ;;  %v2142_v29 = vpack.c.bf16 %v724_v22, %v723_v21  ;;  %v2146_v30 = vpack.c.bf16 %v726_v27, %v725_v23  ;;  %v526_v2 = vcvt.s32.f32 %v518_v59  ;;  %s1650_s0 = scalar_lea.sflag [#allocation4], %s3076_s9  ;;  %s2682_s8 = scalar_lea.vmem %s3415_s14, 1024 }
  0xc7   : > { %677 = vperm.xlu0 %2440, %v667_v14   ;;  %687 = vperm.xlu1 %2441, %v669_v16   ;;  %v538_v25 = vmul.f32 %v3142_v15, %v523_v18  ;;  %v670_v26 = vld [vmem:[%s3126_s17 + $0x18] sm:$0xff]  ;;  %v671_v28 = vld [vmem:[%s3126_s17 + $0x20] sm:$0xff]  ;;  %v556_v34 = vld [vmem:[%s3463_s3 + $0x50] sm:$0xff]  ;;  %v539_v1 = vmul.f32 %v3142_v15, %v524_v58  ;;  %v540_v4 = vmul.f32 %v3142_v15, %v525_v60  ;;  %p2683_p4 = scmp.ne.s32.totalorder %s3415_s14, %s2682_s8  ;;  %s2773_s21 = smov [#allocation11]  }
  0xc8   : > { %2117 = vmatpush3.bf16.msra.mxu0 %v2114_v6  ;;  %v727_v32 = vld [vmem:[#allocation7 + $0x20] sm:$0xff]  ;;  %v557_v35 = vld [vmem:[%s3463_s3 + $0x58] sm:$0xff]  ;;  %v672_v36 = vld [vmem:[%s3126_s17 + $0x28] sm:$0xff]  ;;  %2143 = vmatprep.subr.bf16.mxu1 %v2142_v29  ;;  %v541_v8 = vmul.f32 %v3142_v15, %v526_v2  ;;  %s2686_s15 = sshll.u32 %s2773_s21, 4  ;;  %s2687_s15 = int_to_ptr.vmem [resolvable:$false] %s2686_s15 }
  0xc9   : > { %2119 = vmatprep.subr.bf16.mxu0 %v2118_v9  ;;  %1966 = vmatprep.mubr.f32.mxu0 %v538_v25  ;;  %v673_v37 = vld [vmem:[%s3126_s17 + $0x30] sm:$0xff]  ;;  %v2150_v38 = vpack.c.bf16 %v728_v33, %v727_v32  ;;  %v2130_v39 = vpack.c.bf16 %v557_v35, %v556_v34  ;;  %v730_v41 = vld [vmem:[#allocation7 + $0x38] sm:$0xff]  ;;  %v558_v42 = vld [vmem:[%s3463_s3 + $0x60] sm:$0xff]  ;;  %p2684_p0 = pnand %p2683_p4, %p2981_p5  ;;  %p2689_p6 = scmp.lt.s32.totalorder %s3415_s14, %s2687_s15 }
  0xca   : > { %2145 = vmatpush3.bf16.msra.mxu1 %v2142_v29  ;;  %v729_v40 = vld [vmem:[#allocation7 + $0x30] sm:$0xff]  ;;  %v559_v43 = vld [vmem:[%s3463_s3 + $0x68] sm:$0xff]  ;;  %v674_v44 = vld [vmem:[%s3126_s17 + $0x38] sm:$0xff] }
  0xcb   : > { %682 = vperm.xlu0 %2440, %v668_v19   ;;  %692 = vperm.xlu1 %2441, %v670_v26   ;;  %v2154_v45 = vpack.c.bf16 %v730_v41, %v729_v40  ;;  %v2134_v46 = vpack.c.bf16 %v559_v43, %v558_v42  ;;  %v731_v47 = vld [vmem:[#allocation7 + $0x40] sm:$0xff]  ;;  %v732_v48 = vld [vmem:[#allocation7 + $0x48] sm:$0xff]  ;;  %v560_v49 = vld [vmem:[%s3463_s3 + $0x70] sm:$0xff]  ;;  %s3413_s24 = scalar_lea.hbm %s3514_s13, %s1837_s25  ;;  %p2685_p8 = pneg %p2684_p0 }
  0xcc   : > { %2121 = vmatpush3.bf16.msra.mxu0 %v2118_v9  ;;  %2147 = vmatprep.subr.bf16.mxu1 %v2146_v30  ;;  %v561_v50 = vld [vmem:[%s3463_s3 + $0x78] sm:$0xff]  ;;  %v2158_v53 = vpack.c.bf16 %v732_v48, %v731_v47  ;;  %v733_v56 = vld [vmem:[#allocation7 + $0x50] sm:$0xff]  ;;  %v735_v63 = vld [vmem:[#allocation7 + $0x60] sm:$0xff] }
  0xcd   : > { %2123 = vmatprep.subr.bf16.mxu0 %v2122_v20  ;;  %v2138_v54 = vpack.c.bf16 %v561_v50, %v560_v49  ;;  %v514_v55 = vld [vmem:[%s3080_s16 + $0x8] sm:$0xff]  ;;  %v737_v18 = vld [vmem:[#allocation7 + $0x70] sm:$0xff]  ;;  %v863_v22 = vld [vmem:[#allocation8 + $0x20] sm:$0xff]  ;;  %s2688_s16 = scalar_lea.vmem %s2687_s15, 2048 }
  0xce   : > { %2149 = vmatpush3.bf16.msra.mxu1 %v2146_v30  ;;  %v734_v57 = vld [vmem:[#allocation7 + $0x58] sm:$0xff]  ;;  %v519_v61 = vunpack.c.0.s8 %v514_v55  ;;  %v736_v0 = vld [vmem:[#allocation7 + $0x68] sm:$0xff]  ;;  %v520_v3 = vunpack.c.1.s8 %v514_v55  ;;  %v521_v6 = vunpack.c.2.s8 %v514_v55  ;;  %v522_v10 = vunpack.c.3.s8 %v514_v55  ;;  %v859_v23 = vld [vmem:[#allocation8] sm:$0xff]  ;;  %p2690_p10 = scmp.lt.s32.totalorder %s2688_s16, %s2682_s8 }
  0xcf   : > { %697 = vperm.xlu0 %2440, %v671_v28   ;;  %702 = vperm.xlu1 %2441, %v672_v36   ;;  %v2162_v62 = vpack.c.bf16 %v734_v57, %v733_v56  ;;  %v2166_v7 = vpack.c.bf16 %v736_v0, %v735_v63  ;;  %v738_v19 = vld [vmem:[#allocation7 + $0x78] sm:$0xff]  ;;  %v860_v21 = vld [vmem:[#allocation8 + $0x8] sm:$0xff]  ;;  %v861_v26 = vld [vmem:[#allocation8 + $0x10] sm:$0xff] }
  0xd0   : > { %2125 = vmatpush3.bf16.msra.mxu0 %v2122_v20  ;;  %2151 = vmatprep.subr.bf16.mxu1 %v2150_v38  ;;  %v527_v5 = vcvt.s32.f32 %v519_v61  ;;  %v528_v9 = vcvt.s32.f32 %v520_v3  ;;  %v529_v12 = vcvt.s32.f32 %v521_v6  ;;  %v530_v14 = vcvt.s32.f32 %v522_v10  ;;  %v862_v25 = vld [vmem:[#allocation8 + $0x18] sm:$0xff]  ;;  %v864_v27 = vld [vmem:[#allocation8 + $0x28] sm:$0xff]  ;;  %v875_v36 = vld [vmem:[#allocation8 + $0x80] sm:$0xff]  ;;  %p2691_p3 = por %p2690_p10, %p2689_p6 }
  0xd1   : > { %2127 = vmatprep.subr.bf16.mxu0 %v2126_v31  ;;  %v2170_v20 = vpack.c.bf16 %v738_v19, %v737_v18  ;;  %v2174_v24 = vpack.c.bf16 %v863_v22, %v860_v21  ;;  %v2176_v28 = vpack.c.bf16 %v862_v25, %v859_v23  ;;  %v3187_v29 = vpack.c.bf16 %v864_v27, %v861_v26  ;;  %v866_v30 = vld [vmem:[#allocation8 + $0x38] sm:$0xff]  ;;  %v868_v33 = vld [vmem:[#allocation8 + $0x48] sm:$0xff]  ;;  %v881_v41 = vld [vmem:[#allocation8 + $0xb0] sm:$0xff] }
  0xd2   : > { %2153 = vmatpush3.bf16.msra.mxu1 %v2150_v38  ;;  %v542_v11 = vmul.f32 %v3142_v15, %v527_v5  ;;  %v543_v13 = vmul.f32 %v3142_v15, %v528_v9  ;;  %v544_v16 = vmul.f32 %v3142_v15, %v529_v12  ;;  %v545_v17 = vmul.f32 %v3142_v15, %v530_v14  ;;  %v865_v15 = vld [vmem:[#allocation8 + $0x30] sm:$0xff]  ;;  %v872_v35 = vld [vmem:[#allocation8 + $0x68] sm:$0xff]  ;;  %v871_v38 = vld [vmem:[#allocation8 + $0x60] sm:$0xff]  ;;  %p2692_p9 = pnand %p2691_p3, %p2685_p8 }
  0xd3   : > { %707 = vperm.xlu0 %2440, %v673_v37   ;;  %712 = vperm.xlu1 %2441, %v674_v44   ;;  %v2180_v34 = vpack.c.bf16 %v868_v33, %v865_v15  ;;  %v2182_v37 = vpack.c.bf16 %v875_v36, %v872_v35  ;;  %v878_v40 = vld [vmem:[#allocation8 + $0x98] sm:$0xff]  ;;  %v877_v44 = vld [vmem:[#allocation8 + $0x90] sm:$0xff]  ;;  %v887_v47 = vld [vmem:[#allocation8 + $0xe0] sm:$0xff] }
  0xd4   : > { %2129 = vmatpush3.bf16.msra.mxu0 %v2126_v31  ;;  %2155 = vmatprep.subr.bf16.mxu1 %v2154_v45  ;;  %v869_v31 = vld [vmem:[#allocation8 + $0x50] sm:$0xff]  ;;  %v2186_v43 = vpack.c.bf16 %v881_v41, %v878_v40  ;;  %v883_v50 = vld [vmem:[#allocation8 + $0xc0] sm:$0xff]  ;;  %v886_v51 = vld [vmem:[#allocation8 + $0xd8] sm:$0xff] }
  0xd5   : > { %2131 = vmatprep.subr.bf16.mxu0 %v2130_v39  ;;  %v2178_v32 = vpack.c.bf16 %v869_v31, %v866_v30  ;;  %v890_v52 = vld [vmem:[#allocation8 + $0xf8] sm:$0xff]  ;;  %v889_v56 = vld [vmem:[#allocation8 + $0xf0] sm:$0xff]  ;;  %v892_v57 = vld [vmem:[#allocation8 + $0x108] sm:$0xff] }
  0xd6   : > { %2157 = vmatpush3.bf16.msra.mxu1 %v2154_v45  ;;  %v880_v45 = vld [vmem:[#allocation8 + $0xa8] sm:$0xff]  ;;  %v899_v59 = vld [vmem:[#allocation8 + $0x140] sm:$0xff]  ;;  %v2196_v60 = vpack.c.bf16 %v892_v57, %v889_v56  ;;  %v898_v63 = vld [vmem:[#allocation8 + $0x138] sm:$0xff] }
  0xd7   : > { %2159 = vmatprep.subr.bf16.mxu1 %v2158_v53  ;;  %v2188_v48 = vpack.c.bf16 %v880_v45, %v877_v44  ;;  %v896_v58 = vld [vmem:[#allocation8 + $0x128] sm:$0xff]  ;;  %v902_v0 = vld [vmem:[#allocation8 + $0x158] sm:$0xff]  ;;  %v879_v26 = vld [vmem:[#allocation8 + $0xa0] sm:$0xff] }
  0xd8   : > { %2133 = vmatpush3.bf16.msra.mxu0 %v2130_v39  ;;  %v874_v39 = vld [vmem:[#allocation8 + $0x78] sm:$0xff]  ;;  %v2198_v61 = vpack.c.bf16 %v899_v59, %v896_v58  ;;  %v876_v18 = vld [vmem:[#allocation8 + $0x88] sm:$0xff]  ;;  %v885_v33 = vld [vmem:[#allocation8 + $0xd0] sm:$0xff] }
  0xd9   : > { %2135 = vmatprep.subr.bf16.mxu0 %v2134_v46  ;;  %v2184_v42 = vpack.c.bf16 %v874_v39, %v871_v38  ;;  %v882_v27 = vld [vmem:[#allocation8 + $0xb8] sm:$0xff]  ;;  %v891_v40 = vld [vmem:[#allocation8 + $0x100] sm:$0xff]  ;;  %v900_v44 = vld [vmem:[#allocation8 + $0x148] sm:$0xff] }
  0xda   : > { %2161 = vmatpush3.bf16.msra.mxu1 %v2158_v53  ;;  %v893_v53 = vld [vmem:[#allocation8 + $0x110] sm:$0xff]  ;;  %v2218_v15 = vpack.c.bf16 %v882_v27, %v879_v26  ;;  %v894_v41 = vld [vmem:[#allocation8 + $0x118] sm:$0xff]  ;;  %v1147_v57 = vld [vmem:[#allocation10 + $0x28] sm:$0xff] }
  0xdb   : > { %2163 = vmatprep.subr.bf16.mxu1 %v2162_v62  ;;  %v2194_v55 = vpack.c.bf16 %v893_v53, %v890_v52  ;;  %v1143_v52 = vld [vmem:[#allocation10 + $0x8] sm:$0xff]  ;;  %v1146_v53 = vld [vmem:[#allocation10 + $0x20] sm:$0xff]  ;;  %v1144_v56 = vld [vmem:[#allocation10 + $0x10] sm:$0xff] }
  0xdc   : > { %2137 = vmatpush3.bf16.msra.mxu0 %v2134_v46  ;;  %v884_v46 = vld [vmem:[#allocation8 + $0xc8] sm:$0xff]  ;;  %v2270_v58 = vpack.c.bf16 %v1147_v57, %v1144_v56  ;;  %v1142_v59 = vld [vmem:[#allocation10] sm:$0xff]  ;;  %v1168_v57 = vld [vmem:[#allocation10 + $0xd0] sm:$0xff] }
  0xdd   : > { %2139 = vmatprep.subr.bf16.mxu0 %v2138_v54  ;;  %v2190_v49 = vpack.c.bf16 %v887_v47, %v884_v46  ;;  %v901_v46 = vld [vmem:[#allocation8 + $0x150] sm:$0xff]  ;;  %v904_v47 = vld [vmem:[#allocation8 + $0x168] sm:$0xff]  ;;  %v1182_v56 = vld [vmem:[#allocation10 + $0x140] sm:$0xff] }
  0xde   : > { %2165 = vmatpush3.bf16.msra.mxu1 %v2162_v62  ;;  %v895_v62 = vld [vmem:[#allocation8 + $0x120] sm:$0xff] }
  0xdf   : > { %2167 = vmatprep.subr.bf16.mxu1 %v2166_v7  ;;  %v2200_v2 = vpack.c.bf16 %v898_v63, %v895_v62  ;;  %v1149_v62 = vld [vmem:[#allocation10 + $0x38] sm:$0xff]  ;;  %v1152_v63 = vld [vmem:[#allocation10 + $0x50] sm:$0xff] }
  0xe0   : > { %2141 = vmatpush3.bf16.msra.mxu0 %v2138_v54  ;;  %v2192_v54 = vpack.c.bf16 %v886_v51, %v883_v50  ;;  %v906_v50 = vld [vmem:[#allocation8 + $0x178] sm:$0xff] }
  0xe1   : > { %2175 = vmatprep.subr.bf16.mxu0 %v2174_v24 }
  0xe2   : > { %2169 = vmatpush3.bf16.msra.mxu1 %v2166_v7  ;;  %v867_v7 = vld [vmem:[#allocation8 + $0x40] sm:$0xff] }
  0xe3   : > { %1967 = vmatmul.mubr.f32.vlgmr.msra.gmra.mrb[0].mxu0 %v539_v1  ;;  %2171 = vmatprep.subr.bf16.mxu1 %v2170_v20  ;;  %v905_v1 = vld [vmem:[#allocation8 + $0x170] sm:$0xff] }
  0xe4   : > { %1969 = vmatprep.mubr.f32.mxu0 %v540_v4  ;;  %2177 = vmatpush1.bf16.msra.mxu0 %v2176_v28  ;;  %v2202_v3 = vpack.c.bf16 %v905_v1, %v902_v0 }
  0xe5   : > { %2179 = vmatprep.subr.bf16.mxu0 %v2178_v32 }
  0xe6   : > { %2173 = vmatpush3.bf16.msra.mxu1 %v2170_v20 }
  0xe7   : > { %1970 = vmatmul.mubr.f32.gmra.mrb[2].mxu0 %v541_v8  ;;  %2207 = vmatprep.subr.bf16.mxu1 %v3187_v29  ;;  %v870_v8 = vld [vmem:[#allocation8 + $0x58] sm:$0xff] }
  0xe8   : > { %1972 = vmatprep.mubr.f32.mxu0 %v542_v11  ;;  %2181 = vmatpush1.bf16.msra.mxu0 %v2180_v34  ;;  %v2210_v14 = vpack.c.bf16 %v870_v8, %v867_v7  ;;  %v888_v34 = vld [vmem:[#allocation8 + $0xe8] sm:$0xff] }
  0xe9   : > { %2183 = vmatprep.subr.bf16.mxu0 %v2182_v37  ;;  %v2222_v39 = vpack.c.bf16 %v888_v34, %v885_v33  ;;  %v1155_v8 = vld [vmem:[#allocation10 + $0x68] sm:$0xff]  ;;  %v1170_v33 = vld [vmem:[#allocation10 + $0xe0] sm:$0xff] }
  0xeb   : > { %1973 = vmatmul.mubr.f32.gmra.mrb[4].mxu0 %v543_v13 }
  0xec   : > { %1975 = vmatprep.mubr.f32.mxu0 %v544_v16  ;;  %2185 = vmatpush1.bf16.msra.mxu0 %v2184_v42  ;;  %v2226_v42 = vpack.c.bf16 %v894_v41, %v891_v40  ;;  %v1166_v40 = vld [vmem:[#allocation10 + $0xc0] sm:$0xff]  ;;  %v1169_v41 = vld [vmem:[#allocation10 + $0xd8] sm:$0xff] }
  0xed   : > { %2187 = vmatprep.subr.bf16.mxu0 %v2186_v43  ;;  %v897_v43 = vld [vmem:[#allocation8 + $0x130] sm:$0xff] }
  0xee   : > { %v2230_v45 = vpack.c.bf16 %v900_v44, %v897_v43  ;;  %v1176_v44 = vld [vmem:[#allocation10 + $0x110] sm:$0xff] }
  0xef   : > { %1976 = vmatmul.mubr.f32.gmra.mrb[6].mxu0 %v545_v17  ;;  %v873_v17 = vld [vmem:[#allocation8 + $0x70] sm:$0xff] }
  0xf0   : > { %2189 = vmatpush1.bf16.msra.mxu0 %v2188_v48  ;;  %v2214_v23 = vpack.c.bf16 %v876_v18, %v873_v17  ;;  %v903_v48 = vld [vmem:[#allocation8 + $0x160] sm:$0xff] }
  0xf1   : > { %2191 = vmatprep.subr.bf16.mxu0 %v2190_v49  ;;  %v2204_v49 = vpack.c.bf16 %v904_v47, %v901_v46  ;;  %v2234_v51 = vpack.c.bf16 %v906_v50, %v903_v48  ;;  %v1154_v18 = vld [vmem:[#allocation10 + $0x60] sm:$0xff]  ;;  %v1165_v47 = vld [vmem:[#allocation10 + $0xb8] sm:$0xff]  ;;  %v2256_v48 = vpack.c.bf16 %v1169_v41, %v1166_v40 }
  0xf2   : > { %v1162_v46 = vld [vmem:[#allocation10 + $0xa0] sm:$0xff] }
  0xf4   : > { %2193 = vmatpush1.bf16.msra.mxu0 %v2192_v54  ;;  %v2238_v54 = vpack.c.bf16 %v1146_v53, %v1143_v52  ;;  %v1179_v52 = vld [vmem:[#allocation10 + $0x128] sm:$0xff]  ;;  %v3210_v53 = vld [vmem:[%s3090_s30] sm:$0xff] }
  0xf5   : > { %2195 = vmatprep.subr.bf16.mxu0 %v2194_v55  ;;  %v2772_v55 = vmov 0.0  }
  0xf6   : > { %988 = vmatprep.mubr.f32.mxu0 %v2772_v55 }
  0xf8   : > { %2197 = vmatpush1.bf16.msra.mxu0 %v2196_v60  ;;  %v1145_v60 = vld [vmem:[#allocation10 + $0x18] sm:$0xff] }
  0xf9   : > { %2199 = vmatprep.subr.bf16.mxu0 %v2198_v61  ;;  %v3195_v61 = vld [vmem:[%s3466_s6] ss:$0 sm:$0xff] }
  0xfc   : > { %2201 = vmatpush1.bf16.msra.mxu0 %v2200_v2  ;;  %v2240_v2 = vpack.c.bf16 %v1145_v60, %v1142_v59  ;;  %v2262_v60 = vpack.c.bf16 %v1182_v56, %v1179_v52 }
  0xfd   : > { %2203 = vmatprep.subr.bf16.mxu0 %v2202_v3 }
 0x100   : > { %2205 = vmatpush1.bf16.msra.mxu0 %v2204_v49  ;;  %v1172_v49 = vld [vmem:[#allocation10 + $0xf0] sm:$0xff] }
 0x101   : > { %2239 = vmatprep.subr.bf16.mxu0 %v2238_v54  ;;  %v2282_v54 = vpack.c.bf16 %v1165_v47, %v1162_v46 }
 0x146   : > { %v678_v4 = vpop.permute.xlu0 %677  ;;  %v688_v5 = vpop.permute.xlu1 %687 }
 0x14a   : > { %v683_v9 = vpop.permute.xlu0 %682  ;;  %v693_v11 = vpop.permute.xlu1 %692 }
 0x14e   : > { %v698_v22 = vpop.permute.xlu0 %697  ;;  %v703_v24 = vpop.permute.xlu1 %702 }
 0x152   : > { %v713_v36 = vpop.permute.xlu1 %712 }
 0x1b6   : > { %v1968_v6 = vpop.f32.mrb[0].mxu0 }
 0x1b7   : > { %v628_v10 = vpop.f32.mrb[1].mxu0  ;;  %v716_v13 = vmul.f32 %v1968_v6, %v683_v9  ;;  %v1151_v6 = vld [vmem:[#allocation10 + $0x48] sm:$0xff]  ;;  %v1158_v9 = vld [vmem:[#allocation10 + $0x80] sm:$0xff] }
 0x1b8   : > { %v715_v12 = vmul.f32 %v678_v4, %v628_v10  ;;  %v2242_v4 = vpack.c.bf16 %v1152_v63, %v1149_v62  ;;  %v2246_v17 = vpack.c.bf16 %v1158_v9, %v1155_v8  ;;  %v1181_v62 = vld [vmem:[#allocation10 + $0x138] sm:$0xff]  ;;  %v1180_v9 = vld [vmem:[#allocation10 + $0x130] sm:$0xff] }
 0x1b9   : > { %v1185_v63 = vld [vmem:[#allocation10 + $0x158] sm:$0xff] }
 0x1ba   : > { %v1971_v16 = vpop.f32.mrb[2].mxu0  ;;  %2010 = vmatprep.mubr.f32.mxu1 %v715_v12  ;;  %v1153_v12 = vld [vmem:[#allocation10 + $0x58] sm:$0xff] }
 0x1bb   : > { %v718_v19 = vmul.f32 %v1971_v16, %v693_v11  ;;  %v638_v20 = vpop.f32.mrb[3].mxu0  ;;  %2011 = vmatmul.mubr.f32.vlgmr.msra.gmra.mrb[0].mxu1 %v716_v13  ;;  %v1150_v11 = vld [vmem:[#allocation10 + $0x40] sm:$0xff] }
 0x1bc   : > { %v717_v21 = vmul.f32 %v688_v5, %v638_v20  ;;  %2209 = vmatpush3.bf16.msra.mxu1 %v3187_v29  ;;  %v708_v29 = vpop.permute.xlu0 %707  ;;  %v1148_v5 = vld [vmem:[#allocation10 + $0x30] sm:$0xff] }
 0x1bd   : > { %2211 = vmatprep.subr.bf16.mxu1 %v2210_v14 }
 0x1be   : > { %v1974_v25 = vpop.f32.mrb[4].mxu0  ;;  %2013 = vmatprep.mubr.f32.mxu1 %v717_v21  ;;  %v1161_v21 = vld [vmem:[#allocation10 + $0x98] sm:$0xff] }
 0x1bf   : > { %v648_v28 = vpop.f32.mrb[5].mxu0  ;;  %2014 = vmatmul.mubr.f32.gmra.mrb[2].mxu1 %v718_v19  ;;  %v720_v31 = vmul.f32 %v1974_v25, %v703_v24  ;;  %v1157_v19 = vld [vmem:[#allocation10 + $0x78] sm:$0xff] }
 0x1c0   : > { %v719_v30 = vmul.f32 %v698_v22, %v648_v28  ;;  %2213 = vmatpush3.bf16.msra.mxu1 %v2210_v14  ;;  %v2244_v14 = vpack.c.bf16 %v1151_v6, %v1148_v5  ;;  %v1164_v22 = vld [vmem:[#allocation10 + $0xb0] sm:$0xff]  ;;  %v2248_v26 = vpack.c.bf16 %v1157_v19, %v1154_v18  ;;  %v3232_v19 = vld [vmem:[%s3090_s30 + $0x18] sm:$0xff] }
 0x1c1   : > { %2215 = vmatprep.subr.bf16.mxu1 %v2214_v23  ;;  %v2250_v28 = vpack.c.bf16 %v1164_v22, %v1161_v21  ;;  %v1184_v6 = vld [vmem:[#allocation10 + $0x150] sm:$0xff]  ;;  %v3242_v21 = vld [vmem:[%s3090_s30 + $0x28] sm:$0xff] }
 0x1c2   : > { %v1977_v32 = vpop.f32.mrb[6].mxu0  ;;  %2016 = vmatprep.mubr.f32.mxu1 %v719_v30  ;;  %v1160_v30 = vld [vmem:[#allocation10 + $0x90] sm:$0xff] }
 0x1c3   : > { %v658_v35 = vpop.f32.mrb[7].mxu0  ;;  %2017 = vmatmul.mubr.f32.gmra.mrb[4].mxu1 %v720_v31  ;;  %v722_v38 = vmul.f32 %v1977_v32, %v713_v36  ;;  %v1163_v31 = vld [vmem:[#allocation10 + $0xa8] sm:$0xff]  ;;  %v3225_v18 = vld [vmem:[%s3090_s30 + $0x10] sm:$0xff] }
 0x1c4   : > { %v721_v37 = vmul.f32 %v708_v29, %v658_v35  ;;  %2217 = vmatpush3.bf16.msra.mxu1 %v2214_v23  ;;  %v2274_v23 = vpack.c.bf16 %v1153_v12, %v1150_v11  ;;  %v1167_v32 = vld [vmem:[#allocation10 + $0xc8] sm:$0xff]  ;;  %v1156_v29 = vld [vmem:[#allocation10 + $0x70] sm:$0xff] }
 0x1c5   : > { %2219 = vmatprep.subr.bf16.mxu1 %v2218_v15  ;;  %v1159_v35 = vld [vmem:[#allocation10 + $0x88] sm:$0xff]  ;;  %v3245_v22 = vld [vmem:[%s3090_s30 + $0x30] sm:$0xff] }
 0x1c6   : > { %2019 = vmatprep.mubr.f32.mxu1 %v721_v37  ;;  %v2252_v37 = vpack.c.bf16 %v1163_v31, %v1160_v30 }
 0x1c7   : > { %2020 = vmatmul.mubr.f32.gmra.mrb[6].mxu1 %v722_v38 }
 0x1c8   : > { %2221 = vmatpush3.bf16.msra.mxu1 %v2218_v15 }
 0x1c9   : > { %2223 = vmatprep.subr.bf16.mxu1 %v2222_v39 }
 0x1cc   : > { %2225 = vmatpush3.bf16.msra.mxu1 %v2222_v39  ;;  %v2254_v39 = vpack.c.bf16 %v1170_v33, %v1167_v32  ;;  %v909_v32 = vlaneseq }
 0x1cd   : > { %2227 = vmatprep.subr.bf16.mxu1 %v2226_v42 }
 0x1d0   : > { %2229 = vmatpush3.bf16.msra.mxu1 %v2226_v42  ;;  %v1173_v42 = vld [vmem:[#allocation10 + $0xf8] sm:$0xff] }
 0x1d1   : > { %2231 = vmatprep.subr.bf16.mxu1 %v2230_v45  ;;  %v2258_v50 = vpack.c.bf16 %v1176_v44, %v1173_v42 }
 0x1d4   : > { %2233 = vmatpush3.bf16.msra.mxu1 %v2230_v45  ;;  %v2278_v45 = vpack.c.bf16 %v1159_v35, %v1156_v29  ;;  %v3288_v35 = vld [vmem:[%s3513_s27] sm:$0x7] }
 0x1d5   : > { %2235 = vmatprep.subr.bf16.mxu1 %v2234_v51 }
 0x1d8   : > { %2237 = vmatpush3.bf16.msra.mxu1 %v2234_v51  ;;  %v1175_v51 = vld [vmem:[#allocation10 + $0x108] sm:$0xff] }
 0x1d9   : > { %2271 = vmatprep.subr.bf16.mxu1 %v2270_v58  ;;  %v2260_v59 = vpack.c.bf16 %v1175_v51, %v1172_v49 }
 0x28e   : > { %v2012_v0 = vpop.f32.mrb[0].mxu1 }
 0x28f   : > { %v812_v1 = vpop.f32.mrb[1].mxu1  ;;  %v818_v7 = vadd.f32 %v2012_v0, %v3195_v61 }
 0x290   : > { %v813_v3 = vadd.f32 %v3195_v61, %v812_v1  ;;  %v1188_v1 = vld [vmem:[#allocation10 + $0x170] sm:$0xff] }
 0x291   : > { %v2266_v5 = vpack.c.bf16 %v1188_v1, %v1185_v63 }
 0x292   : > { %v2015_v10 = vpop.f32.mrb[2].mxu1  ;;  %989 = vmatmul.mubr.f32.vlgmr.msra.gmra.mrb[8].mxu0 %v813_v3  ;;  %2054 = vmatprep.mubr.f32.mxu1 %v813_v3  ;;  %v1177_v3 = vld [vmem:[#allocation10 + $0x118] sm:$0xff] }
 0x293   : > { %2241 = vmatpush1.bf16.msra.mxu0 %v2240_v2  ;;  %v822_v13 = vpop.f32.mrb[3].mxu1  ;;  %2055 = vmatmul.mubr.f32.vlgmr.msra.gmra.mrb[8].mxu1 %v818_v7  ;;  %v828_v20 = vadd.f32 %v2015_v10, %v3195_v61  ;;  %v1174_v2 = vld [vmem:[#allocation10 + $0x100] sm:$0xff]  ;;  %v1183_v10 = vld [vmem:[#allocation10 + $0x148] sm:$0xff] }
 0x294   : > { %v823_v16 = vadd.f32 %v3195_v61, %v822_v13  ;;  %994 = vmatprep.mubr.f32.mxu0 %v2772_v55  ;;  %2243 = vmatprep.subr.bf16.mxu0 %v2242_v4  ;;  %v2290_v8 = vpack.c.bf16 %v1177_v3, %v1174_v2  ;;  %v2294_v12 = vpack.c.bf16 %v1183_v10, %v1180_v9  ;;  %v1186_v13 = vld [vmem:[#allocation10 + $0x160] sm:$0xff] }
 0x295   : > { %2273 = vmatpush3.bf16.msra.mxu1 %v2270_v58  ;;  %v1171_v58 = vld [vmem:[#allocation10 + $0xe8] sm:$0xff] }
 0x296   : > { %v2018_v24 = vpop.f32.mrb[4].mxu1  ;;  %995 = vmatmul.mubr.f32.gmra.mrb[10].mxu0 %v818_v7  ;;  %2057 = vmatprep.mubr.f32.mxu1 %v823_v16  ;;  %v2286_v0 = vpack.c.bf16 %v1171_v58, %v1168_v57  ;;  %v1187_v7 = vld [vmem:[#allocation10 + $0x168] sm:$0xff] }
 0x297   : > { %2245 = vmatpush1.bf16.msra.mxu0 %v2244_v14  ;;  %v832_v25 = vpop.f32.mrb[5].mxu1  ;;  %2058 = vmatmul.mubr.f32.gmra.mrb[10].mxu1 %v828_v20  ;;  %v838_v15 = vadd.f32 %v2018_v24, %v3195_v61  ;;  %v2268_v11 = vpack.c.bf16 %v1187_v7, %v1184_v6  ;;  %v1189_v14 = vld [vmem:[#allocation10 + $0x178] sm:$0xff] }
 0x298   : > { %v833_v27 = vadd.f32 %v3195_v61, %v832_v25  ;;  %1000 = vmatprep.mubr.f32.mxu0 %v2772_v55  ;;  %2247 = vmatprep.subr.bf16.mxu0 %v2246_v17  ;;  %v3220_v17 = vld [vmem:[%s3090_s30 + $0x8] sm:$0xff] }
 0x299   : > { %2275 = vmatprep.subr.bf16.mxu1 %v2274_v23 }
 0x29a   : > { %v2021_v34 = vpop.f32.mrb[6].mxu1  ;;  %1001 = vmatmul.mubr.f32.gmra.mrb[12].mxu0 %v823_v16  ;;  %2060 = vmatprep.mubr.f32.mxu1 %v833_v27  ;;  %v2298_v16 = vpack.c.bf16 %v1189_v14, %v1186_v13 }
 0x29b   : > { %2249 = vmatpush1.bf16.msra.mxu0 %v2248_v26  ;;  %v842_v36 = vpop.f32.mrb[7].mxu1  ;;  %2061 = vmatmul.mubr.f32.gmra.mrb[12].mxu1 %v838_v15  ;;  %v848_v43 = vadd.f32 %v2021_v34, %v3195_v61  ;;  %v3282_v34 = vld [vmem:[%s3512_s10] sm:$0x7] }
 0x29c   : > { %v843_v38 = vadd.f32 %v3195_v61, %v842_v36  ;;  %1006 = vmatprep.mubr.f32.mxu0 %v2772_v55  ;;  %2251 = vmatprep.subr.bf16.mxu0 %v2250_v28  ;;  %v1178_v61 = vld [vmem:[#allocation10 + $0x120] sm:$0xff] }
 0x29d   : > { %2277 = vmatpush3.bf16.msra.mxu1 %v2274_v23  ;;  %v2264_v4 = vpack.c.bf16 %v1181_v62, %v1178_v61  ;;  %v3252_v23 = vld [vmem:[%s3090_s30 + $0x38] sm:$0xff] }
 0x29e   : > { %1007 = vmatmul.mubr.f32.gmra.mrb[14].mxu0 %v828_v20  ;;  %2063 = vmatprep.mubr.f32.mxu1 %v843_v38  ;;  %v3235_v20 = vld [vmem:[%s3090_s30 + $0x20] sm:$0xff] }
 0x29f   : > { %2253 = vmatpush1.bf16.msra.mxu0 %v2252_v37  ;;  %2064 = vmatmul.mubr.f32.gmra.mrb[14].mxu1 %v848_v43 }
 0x2a0   : > { %1012 = vmatprep.mubr.f32.mxu0 %v2772_v55  ;;  %2255 = vmatprep.subr.bf16.mxu0 %v2254_v39 }
 0x2a1   : > { %2279 = vmatprep.subr.bf16.mxu1 %v2278_v45  ;;  %2098 = vmatprep.mubr.f32.mxu1 %v3210_v53 }
 0x2a2   : > { %1013 = vmatmul.mubr.f32.gmra.mrb[16].mxu0 %v833_v27  ;;  %2281 = vmatpush3.bf16.msra.mxu1 %v2278_v45 }
 0x2a3   : > { %2257 = vmatpush1.bf16.msra.mxu0 %v2256_v48  ;;  %1018 = vmatprep.mubr.f32.mxu0 %v2772_v55 }
 0x2a4   : > { %2259 = vmatprep.subr.bf16.mxu0 %v2258_v50  ;;  %2283 = vmatprep.subr.bf16.mxu1 %v2282_v54 }
 0x2a6   : > { %1019 = vmatmul.mubr.f32.gmra.mrb[18].mxu0 %v838_v15  ;;  %2285 = vmatpush3.bf16.msra.mxu1 %v2282_v54 }
 0x2a7   : > { %2261 = vmatpush1.bf16.msra.mxu0 %v2260_v59  ;;  %1024 = vmatprep.mubr.f32.mxu0 %v2772_v55 }
 0x2a8   : > { %2263 = vmatprep.subr.bf16.mxu0 %v2262_v60  ;;  %2287 = vmatprep.subr.bf16.mxu1 %v2286_v0 }
 0x2aa   : > { %1025 = vmatmul.mubr.f32.gmra.mrb[20].mxu0 %v843_v38  ;;  %2289 = vmatpush3.bf16.msra.mxu1 %v2286_v0 }
 0x2ab   : > { %2265 = vmatpush1.bf16.msra.mxu0 %v2264_v4  ;;  %1030 = vmatprep.mubr.f32.mxu0 %v2772_v55 }
 0x2ac   : > { %2267 = vmatprep.subr.bf16.mxu0 %v2266_v5  ;;  %2291 = vmatprep.subr.bf16.mxu1 %v2290_v8 }
 0x2ae   : > { %1031 = vmatmul.mubr.f32.gmra.mrb[22].mxu0 %v848_v43  ;;  %2293 = vmatpush3.bf16.msra.mxu1 %v2290_v8 }
 0x2af   : > { %2269 = vmatpush1.bf16.msra.mxu0 %v2268_v11  ;;  %1271 = vmatprep.mubr.f32.mxu0 %v2772_v55 }
 0x2b0   : > { %2295 = vmatprep.subr.bf16.mxu1 %v2294_v12 }
 0x2b2   : > { %1272 = vmatmul.mubr.f32.vlgmr.msra.gmra.mrb[8].mxu0 %v3210_v53  ;;  %2297 = vmatpush3.bf16.msra.mxu1 %v2294_v12 }
 0x2b3   : > { %1277 = vmatprep.mubr.f32.mxu0 %v2772_v55  ;;  %2299 = vmatprep.subr.bf16.mxu1 %v2298_v16 }
 0x2b6   : > { %1278 = vmatmul.mubr.f32.gmra.mrb[10].mxu0 %v3220_v17  ;;  %2301 = vmatpush3.bf16.msra.mxu1 %v2298_v16 }
 0x2b7   : > { %1283 = vmatprep.mubr.f32.mxu0 %v2772_v55 }
 0x2b9   : > { %2099 = vmatmul.mubr.f32.vlgmr.msra.gmra.mrb[16].mxu1 %v3220_v17 }
 0x2ba   : > { %1284 = vmatmul.mubr.f32.gmra.mrb[12].mxu0 %v3225_v18  ;;  %2101 = vmatprep.mubr.f32.mxu1 %v3225_v18 }
 0x2bb   : > { %1289 = vmatprep.mubr.f32.mxu0 %v2772_v55 }
 0x2bd   : > { %2102 = vmatmul.mubr.f32.gmra.mrb[18].mxu1 %v3232_v19 }
 0x2be   : > { %1290 = vmatmul.mubr.f32.gmra.mrb[14].mxu0 %v3232_v19  ;;  %2104 = vmatprep.mubr.f32.mxu1 %v3235_v20 }
 0x2bf   : > { %1295 = vmatprep.mubr.f32.mxu0 %v2772_v55 }
 0x2c1   : > { %2105 = vmatmul.mubr.f32.gmra.mrb[20].mxu1 %v3242_v21 }
 0x2c2   : > { %1296 = vmatmul.mubr.f32.gmra.mrb[16].mxu0 %v3235_v20  ;;  %2107 = vmatprep.mubr.f32.mxu1 %v3245_v22 }
 0x2c3   : > { %1301 = vmatprep.mubr.f32.mxu0 %v2772_v55 }
 0x2c5   : > { %2108 = vmatmul.mubr.f32.gmra.mrb[22].mxu1 %v3252_v23 }
 0x2c6   : > { %1302 = vmatmul.mubr.f32.gmra.mrb[18].mxu0 %v3242_v21 }
 0x2c7   : > { %1307 = vmatprep.mubr.f32.mxu0 %v2772_v55 }
 0x2ca   : > { %1308 = vmatmul.mubr.f32.gmra.mrb[20].mxu0 %v3245_v22 }
 0x2cb   : > { %1313 = vmatprep.mubr.f32.mxu0 %v2772_v55  ;;  %v3276_v55 = vshrl.u32 %v909_v32, 7 }
 0x2cd   : > { %v911_v33 = vsub.s32 0, %v3276_v55  ;;  %v915_v29 = vsub.s32 1, %v3276_v55 }
 0x2ce   : > { %1314 = vmatmul.mubr.f32.gmra.mrb[22].mxu0 %v3252_v23 }
 0x2cf   : > { %v912_v36 = vrot.slane %v3288_v35, %v911_v33  ;;  %v1195_v37 = vrot.slane %v3282_v34, %v911_v33  ;;  %v916_v38 = vrot.slane %v3288_v35, %v915_v29  ;;  %v1199_v39 = vrot.slane %v3282_v34, %v915_v29 }
 0x2d1   : > { %v3294_v40 = vadd.f32 %v1195_v37, %v912_v36  ;;  %v3296_v41 = vadd.f32 %v1199_v39, %v916_v38 }
 0x366   : > { %v3260_v24 = vpop.f32.mrb[8].mxu1 }
 0x367   : > { %v3262_v25 = vpop.f32.mrb[9].mxu1 }
 0x36a   : > { %v3264_v26 = vpop.f32.mrb[10].mxu1 }
 0x36b   : > { %v3266_v27 = vpop.f32.mrb[11].mxu1 }
 0x36e   : > { %v3268_v28 = vpop.f32.mrb[12].mxu1 }
 0x36f   : > { %v3270_v30 = vpop.f32.mrb[13].mxu1 }
 0x372   : > { %v3272_v31 = vpop.f32.mrb[14].mxu1 }
 0x373   : > { %v3274_v15 = vpop.f32.mrb[15].mxu1 }
 0x385   : > { %v1273_v42 = vpop.f32.mrb[8].mxu0 }
 0x386   : > { %v2303_v43 = vadd.f32 %v3294_v40, %v1273_v42  ;;  %v1275_v44 = vpop.f32.mrb[9].mxu0 }
 0x387   : > { %v2305_v45 = vadd.f32 %v3296_v41, %v1275_v44  ;;  %v919_v44 = vsub.s32 2, %v3276_v55 }
 0x388   : > { %v1433_v46 = vsub.f32 0.0, %v2303_v43 }
 0x389   : > { %v1279_v47 = vpop.f32.mrb[10].mxu0  ;;  %v1489_v49 = vsub.f32 0.0, %v2305_v45  ;;  %v3328_v55 = vrot.slane %v3282_v34, %v919_v44 }
 0x38a   : > { %v1441_v48 = vmul.f32 1.442695, %v1433_v46  ;;  %v2307_v50 = vadd.f32 %v3294_v40, %v1279_v47  ;;  %v1281_v51 = vpop.f32.mrb[11].mxu0 }
 0x38b   : > { %v2309_v52 = vadd.f32 %v3296_v41, %v1281_v51  ;;  %v1497_v60 = vmul.f32 1.442695, %v1489_v49 }
 0x38c   : > { %2442 = vpow2.f32 %v1441_v48  ;;  %v1434_v54 = vsub.f32 0.0, %v2307_v50  ;;  %v3302_v56 = vpop.f32.mrb[16].mxu1 }
 0x38d   : > { %v1490_v57 = vsub.f32 0.0, %v2309_v52  ;;  %v1285_v58 = vpop.f32.mrb[12].mxu0  ;;  %v3304_v59 = vpop.f32.mrb[17].mxu1 }
 0x38e   : > { %v1443_v61 = vmul.f32 1.442695, %v1434_v54  ;;  %v2311_v62 = vadd.f32 %v3294_v40, %v1285_v58  ;;  %v1287_v63 = vpop.f32.mrb[13].mxu0 }
 0x38f   : > { %v2313_v0 = vadd.f32 %v3296_v41, %v1287_v63  ;;  %v1499_v3 = vmul.f32 1.442695, %v1490_v57 }
 0x390   : > { %2444 = vpow2.f32 %v1443_v61  ;;  %v1435_v1 = vsub.f32 0.0, %v2311_v62  ;;  %v3308_v2 = vpop.f32.mrb[18].mxu1  ;;  %v3331_v61 = vrot.slane %v3288_v35, %v919_v44  ;;  %v1387_v35 = vadd.f32 %v3304_v59, %v3328_v55 }
 0x391   : > { %v1291_v4 = vpop.f32.mrb[14].mxu0  ;;  %v3310_v5 = vpop.f32.mrb[19].mxu1  ;;  %2446 = vpow2.f32 %v1497_v60  ;;  %v1491_v9 = vsub.f32 0.0, %v2313_v0 }
 0x392   : > { %v1445_v6 = vmul.f32 1.442695, %v1435_v1  ;;  %v2315_v7 = vadd.f32 %v3294_v40, %v1291_v4  ;;  %v1293_v8 = vpop.f32.mrb[15].mxu0 }
 0x393   : > { %v2317_v10 = vadd.f32 %v3296_v41, %v1293_v8  ;;  %v1501_v38 = vmul.f32 1.442695, %v1491_v9 }
 0x394   : > { %2448 = vpow2.f32 %v1445_v6  ;;  %v1436_v11 = vsub.f32 0.0, %v2315_v7  ;;  %v3314_v12 = vpop.f32.mrb[20].mxu1 }
 0x395   : > { %2450 = vpow2.f32 %v1499_v3  ;;  %v1297_v13 = vpop.f32.mrb[16].mxu0  ;;  %v3316_v14 = vpop.f32.mrb[21].mxu1  ;;  %v1492_v33 = vsub.f32 0.0, %v2317_v10 }
 0x396   : > { %v2443_v16 = vpop.eup %2442  ;;  %v1447_v32 = vmul.f32 1.442695, %v1436_v11  ;;  %v2319_v29 = vadd.f32 %v3294_v40, %v1297_v13  ;;  %v1299_v36 = vpop.f32.mrb[17].mxu0  ;;  %v1104_v11 = vadd.f32 %v3262_v25, %v3331_v61 }
 0x397   : > { %v1457_v37 = vadd.f32 1.0, %v2443_v16  ;;  %v2321_v39 = vadd.f32 %v3296_v41, %v1299_v36  ;;  %v1503_v48 = vmul.f32 1.442695, %v1492_v33  ;;  %v1392_v16 = vadd.f32 %v3302_v56, %v3328_v55 }
 0x398   : > { %2452 = vpow2.f32 %v1447_v32  ;;  %v1437_v42 = vsub.f32 0.0, %v2319_v29  ;;  %v3320_v43 = vpop.f32.mrb[22].mxu1 }
 0x399   : > { %2454 = vrcp.f32 %v1457_v37  ;;  %v1303_v45 = vpop.f32.mrb[18].mxu0  ;;  %v3323_v46 = vpop.f32.mrb[23].mxu1  ;;  %v1493_v50 = vsub.f32 0.0, %v2321_v39 }
 0x39a   : > { %v2445_v47 = vpop.eup %2444  ;;  %v1449_v49 = vmul.f32 1.442695, %v1437_v42  ;;  %v2323_v51 = vadd.f32 %v3294_v40, %v1303_v45  ;;  %v1305_v52 = vpop.f32.mrb[19].mxu0  ;;  %2456 = vpow2.f32 %v1501_v38 }
 0x39b   : > { %v1458_v54 = vadd.f32 1.0, %v2445_v47  ;;  %v2325_v57 = vadd.f32 %v3296_v41, %v1305_v52  ;;  %v2447_v58 = vpop.eup %2446  ;;  %v1505_v0 = vmul.f32 1.442695, %v1493_v50 }
 0x39c   : > { %2458 = vpow2.f32 %v1449_v49  ;;  %v1438_v60 = vsub.f32 0.0, %v2323_v51  ;;  %v1513_v7 = vadd.f32 1.0, %v2447_v58 }
 0x39d   : > { %2460 = vrcp.f32 %v1458_v54  ;;  %v1309_v62 = vpop.f32.mrb[20].mxu0  ;;  %v1494_v9 = vsub.f32 0.0, %v2325_v57  ;;  %v1397_v54 = vadd.f32 %v3310_v5, %v3328_v55  ;;  %v1402_v5 = vadd.f32 %v3308_v2, %v3328_v55 }
 0x39e   : > { %v2449_v63 = vpop.eup %2448  ;;  %2462 = vpow2.f32 %v1503_v48  ;;  %v1451_v1 = vmul.f32 1.442695, %v1438_v60  ;;  %v2327_v3 = vadd.f32 %v3294_v40, %v1309_v62  ;;  %v1311_v4 = vpop.f32.mrb[21].mxu0 }
 0x39f   : > { %v2451_v6 = vpop.eup %2450  ;;  %v1459_v8 = vadd.f32 1.0, %v2449_v63  ;;  %v2329_v10 = vadd.f32 %v3296_v41, %v1311_v4  ;;  %v1507_v59 = vmul.f32 1.442695, %v1494_v9 }
 0x3a0   : > { %2464 = vpow2.f32 %v1451_v1  ;;  %v1439_v34 = vsub.f32 0.0, %v2327_v3  ;;  %v1514_v29 = vadd.f32 1.0, %v2451_v6  ;;  %v1114_v1 = vadd.f32 %v3266_v27, %v3331_v61 }
 0x3a1   : > { %2466 = vrcp.f32 %v1459_v8  ;;  %v1495_v13 = vsub.f32 0.0, %v2329_v10  ;;  %v1315_v32 = vpop.f32.mrb[22].mxu0 }
 0x3a2   : > { %v2453_v33 = vpop.eup %2452  ;;  %2468 = vpow2.f32 %v1505_v0  ;;  %v1453_v36 = vmul.f32 1.442695, %v1439_v34  ;;  %v2331_v37 = vadd.f32 %v3294_v40, %v1315_v32  ;;  %v1317_v38 = vpop.f32.mrb[23].mxu0  ;;  %v1109_v40 = vadd.f32 %v3260_v24, %v3331_v61 }
 0x3a3   : > { %v2455_v39 = vpop.eup %2454  ;;  %2470 = vrcp.f32 %v1513_v7  ;;  %v1460_v42 = vadd.f32 1.0, %v2453_v33  ;;  %v1509_v44 = vmul.f32 1.442695, %v1495_v13  ;;  %v2333_v47 = vadd.f32 %v3296_v41, %v1317_v38 }
 0x3a4   : > { %2472 = vpow2.f32 %v1453_v36  ;;  %v1440_v25 = vsub.f32 0.0, %v2331_v37  ;;  %v1537_v45 = vmul.f32 %v2455_v39, %v1387_v35  ;;  %v2457_v48 = vpop.eup %2456  ;;  %v1119_v13 = vadd.f32 %v3264_v26, %v3331_v61 }
 0x3a5   : > { %2474 = vrcp.f32 %v1460_v42  ;;  %v1515_v58 = vadd.f32 1.0, %v2457_v48  ;;  %v1496_v41 = vsub.f32 0.0, %v2333_v47  ;;  %v1407_v32 = vadd.f32 %v3316_v14, %v3328_v55 }
 0x3a6   : > { %v2459_v56 = vpop.eup %2458  ;;  %2476 = vrcp.f32 %v1514_v29  ;;  %v1455_v49 = vmul.f32 1.442695, %v1440_v25  ;;  %v1545_v50 = vadd.f32 %v1537_v45, %v1104_v11  ;;  %v1124_v37 = vadd.f32 %v3270_v30, %v3331_v61 }
 0x3a7   : > { %v2461_v51 = vpop.eup %2460  ;;  %v1461_v52 = vadd.f32 1.0, %v2459_v56  ;;  %2478 = vpow2.f32 %v1507_v59  ;;  %v1511_v6 = vmul.f32 1.442695, %v1496_v41  ;;  %v1412_v26 = vadd.f32 %v3314_v12, %v3328_v55 }
 0x3a8   : > { %v2463_v57 = vpop.eup %2462  ;;  %2480 = vpow2.f32 %v1509_v44  ;;  %v1538_v60 = vmul.f32 %v2461_v51, %v1392_v16  ;;  %v1129_v30 = vadd.f32 %v3268_v28, %v3331_v61 }
 0x3a9   : > { %2482 = vrcp.f32 %v1461_v52  ;;  %v1516_v3 = vadd.f32 1.0, %v2463_v57 }
 0x3aa   : > { %v2465_v62 = vpop.eup %2464  ;;  %v1546_v63 = vadd.f32 %v1538_v60, %v1109_v40  ;;  %2484 = vpow2.f32 %v1455_v49 }
 0x3ab   : > { %v2467_v0 = vpop.eup %2466  ;;  %v1462_v24 = vadd.f32 1.0, %v2465_v62  ;;  %2486 = vtanh.f32 %v1545_v50  ;;  %v1417_v50 = vadd.f32 %v3323_v46, %v3328_v55  ;;  %v1134_v62 = vadd.f32 %v3274_v15, %v3331_v61 }
 0x3ac   : > { %v2469_v4 = vpop.eup %2468  ;;  %2488 = vrcp.f32 %v1515_v58  ;;  %v1539_v7 = vmul.f32 %v2467_v0, %v1397_v54  ;;  %v1422_v15 = vadd.f32 %v3320_v43, %v3328_v55 }
 0x3ad   : > { %v2471_v8 = vpop.eup %2470  ;;  %2490 = vrcp.f32 %v1462_v24  ;;  %v1517_v35 = vadd.f32 1.0, %v2469_v4 }
 0x3ae   : > { %v2473_v9 = vpop.eup %2472  ;;  %2492 = vtanh.f32 %v1546_v63  ;;  %v1547_v10 = vadd.f32 %v1539_v7, %v1114_v1  ;;  %v1561_v39 = vsub.f32 1.0, %v2471_v8  ;;  %v1577_v45 = vmul.f32 %v2471_v8, %v3210_v53 }
 0x3af   : > { %v2475_v34 = vpop.eup %2474  ;;  %2494 = vrcp.f32 %v1516_v3  ;;  %v1463_v11 = vadd.f32 1.0, %v2473_v9 }
 0x3b0   : > { %v2477_v27 = vpop.eup %2476  ;;  %2496 = vpow2.f32 %v1511_v6  ;;  %v1540_v16 = vmul.f32 %v2475_v34, %v1402_v5 }
 0x3b1   : > { %v2479_v2 = vpop.eup %2478  ;;  %2498 = vrcp.f32 %v1463_v11  ;;  %v1562_v49 = vsub.f32 1.0, %v2477_v27  ;;  %v1578_v53 = vmul.f32 %v2477_v27, %v3220_v17 }
 0x3b2   : > { %v2481_v33 = vpop.eup %2480  ;;  %v1548_v29 = vadd.f32 %v1540_v16, %v1119_v13  ;;  %2500 = vtanh.f32 %v1547_v10  ;;  %v1518_v44 = vadd.f32 1.0, %v2479_v2  ;;  %v1139_v2 = vadd.f32 %v3272_v31, %v3331_v61 }
 0x3b3   : > { %v2483_v36 = vpop.eup %2482  ;;  %2502 = vrcp.f32 %v1517_v35  ;;  %v1519_v12 = vadd.f32 1.0, %v2481_v33 }
 0x3b4   : > { %v2485_v38 = vpop.eup %2484  ;;  %2504 = vtanh.f32 %v1548_v29  ;;  %v1541_v42 = vmul.f32 %v2483_v36, %v1407_v32 }
 0x3b5   : > { %v2487_v59 = vpop.eup %2486  ;;  %v1464_v14 = vadd.f32 1.0, %v2485_v38 }
 0x3b6   : > { %v2489_v25 = vpop.eup %2488  ;;  %v1569_v47 = vmul.f32 %v2487_v59, %v1561_v39  ;;  %v1549_v48 = vadd.f32 %v1541_v42, %v1124_v37 }
 0x3b7   : > { %v2491_v56 = vpop.eup %2490  ;;  %2506 = vrcp.f32 %v1464_v14  ;;  %v1563_v46 = vsub.f32 1.0, %v2489_v25  ;;  %v1579_v1 = vmul.f32 %v2489_v25, %v3225_v18 }
 0x3b8   : > { %v2493_v51 = vpop.eup %2492  ;;  %v3364_v40 = vadd.f32 %v1577_v45, %v1569_v47  ;;  %v1542_v52 = vmul.f32 %v2491_v56, %v1412_v26  ;;  %2508 = vtanh.f32 %v1549_v48 }
 0x3b9   : > { %v2495_v54 = vpop.eup %2494  ;;  %2510 = vrcp.f32 %v1518_v44  ;;  %v1570_v57 = vmul.f32 %v2493_v51, %v1562_v49 }
 0x3ba   : > { %v2497_v58 = vpop.eup %2496  ;;  %v1601_v60 = vmin.f32 %v3364_v40, 0.0  ;;  %v1550_v28 = vadd.f32 %v1542_v52, %v1129_v30  ;;  %2512 = vrcp.f32 %v1519_v12  ;;  %v1564_v4 = vsub.f32 1.0, %v2495_v54 }
 0x3bb   : > { %v2499_v41 = vpop.eup %2498  ;;  %v3370_v63 = vadd.f32 %v1578_v53, %v1570_v57  ;;  %v1520_v8 = vadd.f32 1.0, %v2497_v58  ;;  %v1580_v10 = vmul.f32 %v2495_v54, %v3232_v19  ;;  %vm1593_vm0 = vcmp.gt.f32.partialorder %v3364_v40, 0.0 }
 0x3bc   : > { %v2501_v0 = vpop.eup %2500  ;;  %v1609_v3 = vmul.f32 1.442695, %v1601_v60  ;;  %v1543_v24 = vmul.f32 %v2499_v41, %v1417_v50  ;;  %2514 = vtanh.f32 %v1550_v28 }
 0x3bd   : > { %v2503_v17 = vpop.eup %2502  ;;  %v1602_v6 = vmin.f32 %v3370_v63, 0.0  ;;  %v1571_v5 = vmul.f32 %v2501_v0, %v1563_v46  ;;  %vm1594_vm1 = vcmp.gt.f32.partialorder %v3370_v63, 0.0 }
 0x3be   : > { %v2505_v7 = vpop.eup %2504  ;;  %2516 = vpow2.f32 %v1609_v3  ;;  %v1551_v9 = vadd.f32 %v1543_v24, %v1134_v62  ;;  %v1565_v27 = vsub.f32 1.0, %v2503_v17  ;;  %v1581_v19 = vmul.f32 %v2503_v17, %v3235_v20 }
 0x3bf   : > { %v1611_v34 = vmul.f32 1.442695, %v1602_v6  ;;  %v1572_v18 = vmul.f32 %v2505_v7, %v1564_v4  ;;  %v3377_v35 = vadd.f32 %v1579_v1, %v1571_v5 }
 0x3c0   : > { %2518 = vtanh.f32 %v1551_v9 }
 0x3c1   : > { %v2507_v11 = vpop.eup %2506  ;;  %2520 = vpow2.f32 %v1611_v34  ;;  %v3379_v13 = vadd.f32 %v1580_v10, %v1572_v18  ;;  %v1603_v16 = vmin.f32 %v3377_v35, 0.0  ;;  %vm1595_vm2 = vcmp.gt.f32.partialorder %v3377_v35, 0.0 }
 0x3c2   : > { %v2509_v32 = vpop.eup %2508  ;;  %2522 = vrcp.f32 %v1520_v8  ;;  %v1544_v43 = vmul.f32 %v2507_v11, %v1422_v15 }
 0x3c3   : > { %v2511_v55 = vpop.eup %2510  ;;  %v1604_v33 = vmin.f32 %v3379_v13, 0.0  ;;  %v1613_v29 = vmul.f32 1.442695, %v1603_v16  ;;  %v1573_v36 = vmul.f32 %v2509_v32, %v1565_v27  ;;  %vm1596_vm3 = vcmp.gt.f32.partialorder %v3379_v13, 0.0 }
 0x3c4   : > { %v1552_v37 = vadd.f32 %v1544_v43, %v1139_v2  ;;  %v2513_v26 = vpop.eup %2512  ;;  %v1566_v42 = vsub.f32 1.0, %v2511_v55  ;;  %v1582_v31 = vmul.f32 %v2511_v55, %v3242_v21 }
 0x3c5   : > { %v1615_v38 = vmul.f32 1.442695, %v1604_v33  ;;  %2524 = vpow2.f32 %v1613_v29  ;;  %v1589_v39 = vadd.f32 %v1581_v19, %v1573_v36  ;;  %v1567_v20 = vsub.f32 1.0, %v2513_v26 }
 0x3c6   : > { %2526 = vtanh.f32 %v1552_v37  ;;  %v2515_v59 = vpop.eup %2514  ;;  %v1583_v30 = vmul.f32 %v2513_v26, %v3245_v22 }
 0x3c7   : > { %2528 = vpow2.f32 %v1615_v38  ;;  %v1574_v61 = vmul.f32 %v2515_v59, %v1566_v42  ;;  %v1605_v14 = vmin.f32 %v1589_v39, 0.0  ;;  %vm1597_vm4 = vcmp.gt.f32.partialorder %v1589_v39, 0.0 }
 0x3c8   : > { %v2517_v44 = vpop.eup %2516 }
 0x3c9   : > { %v1822_v25 = vadd.f32 -1.0, %v2517_v44  ;;  %v1590_v47 = vadd.f32 %v1582_v31, %v1574_v61  ;;  %v1617_v48 = vmul.f32 1.442695, %v1605_v14 }
 0x3ca   : > { %v2519_v45 = vpop.eup %2518 }
 0x3cb   : > { %v2521_v56 = vpop.eup %2520  ;;  %v1633_v49 = vsel %vm1593_vm0, %v3364_v40, %v1822_v25  ;;  %v1575_v50 = vmul.f32 %v2519_v45, %v1567_v20  ;;  %v1606_v21 = vmin.f32 %v1590_v47, 0.0  ;;  %2530 = vpow2.f32 %v1617_v48 }
 0x3cc   : > { %v2523_v51 = vpop.eup %2522  ;;  %v1823_v12 = vadd.f32 -1.0, %v2521_v56  ;;  %1641 = vst [vmem:[%s3392_s23] sm:$0xff] %v1633_v49  ;;  %vm1598_vm5 = vcmp.gt.f32.partialorder %v1590_v47, 0.0 }
 0x3cd   : > { %v1591_v52 = vadd.f32 %v1583_v30, %v1575_v50  ;;  %v1619_v53 = vmul.f32 1.442695, %v1606_v21  ;;  %v1568_v40 = vsub.f32 1.0, %v2523_v51  ;;  %v1584_v41 = vmul.f32 %v2523_v51, %v3252_v23 }
 0x3ce   : > { %v1634_v54 = vsel %vm1594_vm1, %v3370_v63, %v1823_v12 }
 0x3cf   : > { %v2525_v22 = vpop.eup %2524  ;;  %1642 = vst [vmem:[%s3392_s23 + $0x8] sm:$0xff] %v1634_v54  ;;  %v1607_v57 = vmin.f32 %v1591_v52, 0.0  ;;  %2532 = vpow2.f32 %v1619_v53  ;;  %vm1599_vm6 = vcmp.gt.f32.partialorder %v1591_v52, 0.0 }
 0x3d0   : > { %v2527_v58 = vpop.eup %2526  ;;  %v1824_v60 = vadd.f32 -1.0, %v2525_v22 }
 0x3d1   : > { %v2529_v28 = vpop.eup %2528  ;;  %v1576_v62 = vmul.f32 %v2527_v58, %v1568_v40  ;;  %v1621_v46 = vmul.f32 1.442695, %v1607_v57 }
 0x3d2   : > { %v1825_v0 = vadd.f32 -1.0, %v2529_v28  ;;  %v1635_v63 = vsel %vm1595_vm2, %v3377_v35, %v1824_v60 }
 0x3d3   : > { %1643 = vst [vmem:[%s3392_s23 + $0x10] sm:$0xff] %v1635_v63  ;;  %v1592_v1 = vadd.f32 %v1584_v41, %v1576_v62  ;;  %2534 = vpow2.f32 %v1621_v46 }
 0x3d4   : > { %v1636_v3 = vsel %vm1596_vm3, %v3379_v13, %v1825_v0 }
 0x3d5   : > { %1644 = vst [vmem:[%s3392_s23 + $0x18] sm:$0xff] %v1636_v3  ;;  %v1608_v24 = vmin.f32 %v1592_v1, 0.0  ;;  %v2531_v17 = vpop.eup %2530  ;;  %vm1600_vm7 = vcmp.gt.f32.partialorder %v1592_v1, 0.0 }
 0x3d6   : > { %v1826_v23 = vadd.f32 -1.0, %v2531_v17 }
 0x3d7   : > { %v1623_v4 = vmul.f32 1.442695, %v1608_v24 }
 0x3d8   : > { %v1637_v6 = vsel %vm1597_vm4, %v1589_v39, %v1826_v23 }
 0x3d9   : > { %2536 = vpow2.f32 %v1623_v4  ;;  %v2533_v5 = vpop.eup %2532  ;;  %1645 = vst [vmem:[%s3392_s23 + $0x20] sm:$0xff] %v1637_v6 }
 0x3da   : > { %v1827_v7 = vadd.f32 -1.0, %v2533_v5 }
 0x3dc   : > { %v1638_v15 = vsel %vm1598_vm5, %v1590_v47, %v1827_v7 }
 0x3dd   : > { %v2535_v8 = vpop.eup %2534  ;;  %1646 = vst [vmem:[%s3392_s23 + $0x28] sm:$0xff] %v1638_v15 }
 0x3de   : > { %v1828_v9 = vadd.f32 -1.0, %v2535_v8 }
 0x3e0   : > { %v1639_v10 = vsel %vm1599_vm6, %v1591_v52, %v1828_v9 }
 0x3e1   : > { %1647 = vst [vmem:[%s3392_s23 + $0x30] sm:$0xff] %v1639_v10 }
 0x3e3   : > { %v2537_v34 = vpop.eup %2536 }
 0x3e4   : > { %v1829_v18 = vadd.f32 -1.0, %v2537_v34 }
 0x3e6   : > { %v1640_v35 = vsel %vm1600_vm7, %v1592_v1, %v1829_v18 }
 0x3e7   : > { %1648 = vst [vmem:[%s3392_s23 + $0x38] sm:$0xff] %v1640_v35 }
 0x3e8   : > { %2695 = shalt.err (!%p2692_p9)
}
 0x3e9   : > { %s2696_s17 = scalar_lea.hbm %s3413_s24, 1024  ;;  %s2700_s10 = scalar_lea.hbm %s3514_s13, 2048 }
 0x3ea   : > { %p2697_p13 = scmp.ne.s32.totalorder %s3413_s24, %s2696_s17  ;;  %p2701_p12 = scmp.lt.u32.totalorder %s3413_s24, %s3514_s13 }
 0x3eb   : > { %p2702_p1 = scmp.lt.u32.totalorder %s2700_s10, %s2696_s17  ;;  %p2704_p4 = scmp.lt.u32.totalorder %s2696_s17, %s3413_s24 }
 0x3ec   : > { %p2698_p11 = pnand %p2697_p13, %p2981_p5 }
 0x3ed   : > { %p2703_p2 = por %p2702_p1, %p2701_p12 }
 0x3ee   : > { %p2699_p7 = pneg %p2698_p11 }
 0x3ef   : > { %p2705_p0 = por %p2704_p4, %p2703_p2 }
 0x3f1   : > { %p2706_p8 = pnand %p2705_p0, %p2699_p7 }
 0x3f3   : > { %2709 = shalt.err (!%p2706_p8)
}
 0x3f4   : > { %s2774_s27 = smov 128   ;;  %s2775_s23 = smov 8  }
 0x3f5   : > { %2366 = dma.vmem_to_hbm [thread:$0]  (%p2981_p5), %s3415_s14, 1024, %s3413_s24, %s1650_s0, %s2774_s27, %s2774_s27, %s2775_s23  }
 0x3f6 PF: > { %s3515_s25 = sld [smem:[#allocation17_spill]]  ;;  %s3516_s5 = sld [smem:[#allocation18_spill]] }
 0x3f7   : > { %p3518_p10 = scmp.ge.s32.totalorder %s2760_s20, 2 }
 0x3fc   : > { %s1678_s12 = sand.u32 1, %s3515_s25   ;;  %p3517_p6 = scmp.ne.s32.totalorder %s3516_s5, 0 }
 0x3fd   : > { %s1679_s8 = scalar_lea.sflag [#allocation4], %s1678_s12 }
 0x3fe   : > { %p2386_p3 = pnand %p3518_p10, %p3517_p6 }
 0x400   : > { %2743 = dma.done.wait (!%p2386_p3), %s1679_s8, 1024  }
 0x401   : > { %2745 = vsyncadd (!%p2386_p3), %s1679_s8, 4294966272  ;;  %p28_p9 = scmp.ge.s32.totalorder %s2949_s26, 4   ;;  %s3519_s17 = smov %s2752_s18 }
 0x402   : > { %s3520_s18 = smov %s2756_s19  ;;  %s3521_s19 = smov %s2977_s28 }
 0x403   : > { %s3522_s20 = smov %s2949_s26  ;;  %30 = sbr.rel (!%p28_p9) target bundleno = 16 (0x10), region = 137 }
 0x40a   :  { %1684 = vsyncpa [#allocation3], 1 }
 0x40b   :  { %1686 = vsyncpa [#allocation3 + $0x1], 1 }
 0x40c   :  { %1687 = vsyncpa [#allocation6], 1 }
 0x40d   :  { %1689 = vsyncpa [#allocation6 + $0x1], 1 }
 0x40e   :  { %1690 = vsyncpa [#allocation9], 1 }
 0x40f   :  { %1691 = vsyncpa [#allocation4], 1 }
 0x410   :  { %1693 = vsyncpa [#allocation4 + $0x1], 1 }

</bundles_post_ra>
